<compile_context>
chip_gen: v5e
topology: v5e:2x2
jax: 0.10.0
libtpu: 0.0.40
codegen_flags: <defaults>
</compile_context>

<pallas_src>
import functools

import jax
import jax.numpy as jnp
from jax.experimental import pallas as pl
from jax.experimental.pallas import tpu as pltpu


_NEG_BIG = -1e30          # large finite negative for masked logits (robust vs -inf)
_LEAKY_SLOPE = 0.2        # PyG GATConv default negative_slope

_VMEM = pl.BlockSpec(memory_space=pltpu.MemorySpace.VMEM)


# ----------------------------------------------------------------------------
# Fused Pallas kernel
# ----------------------------------------------------------------------------

def gat_classifier_kernel(src_ref, dst_ref, x_ref, p_ref,
                          logits_ref, alpha_ref, acc_ref,
                          *, heads1, c1, hidden, out_dim, num_graphs, f_in, offsets):
    """Full GATClassifier forward.

    src_ref/dst_ref : (1, E) int32 edge endpoints, lane-major (src -> dst)
    x_ref           : (N, F_in) node features
    p_ref           : (R, 128) packed parameter slab (all weights/biases + pool)
    logits_ref      : (G, out_dim)
    alpha_ref       : (1, E) per-edge layer-2 attention (lane-dense)
    acc_ref         : (N, H*C) VMEM scratch for the per-head conv1 aggregation
    """
    n = x_ref.shape[0]
    e_cnt = src_ref.shape[1]
    H, C, hid, G = heads1, c1, hidden, num_graphs

    def blk(name, rows, cols):
        off = offsets[name]
        return p_ref[off:off + rows, 0:cols]          # static slice: free

    def mm(a, b):
        return jnp.dot(a, b, preferred_element_type=jnp.float32)

    # --- edge structure: lane-dense (N, E) one-hots; adjacency on the MXU ------
    node_ids = jax.lax.broadcasted_iota(jnp.int32, (n, e_cnt), 0)
    src_oh = (src_ref[...] == node_ids).astype(jnp.float32)   # (N, E): src_oh[j, e]
    dst_oh = (dst_ref[...] == node_ids).astype(jnp.float32)   # (N, E): dst_oh[i, e]
    # adj[i, j] = #edges j -> i; contraction over E, no transpose of either operand
    adj = jax.lax.dot_general(dst_oh, src_oh, (((1,), (1,)), ((), ())),
                              preferred_element_type=jnp.float32)        # (N, N)
    mult_mask = (adj > 0.0).astype(jnp.float32)                          # (N, N)
    add_mask = jnp.where(adj > 0.0, 0.0, _NEG_BIG)                       # (N, N)

    def masked_softmax(e):
        # Row-wise softmax over sources restricted to existing edges; rows with no
        # incoming edges yield all-zero attention (PyG segment softmax semantics,
        # add_self_loops=False).  Mask work is hoisted: one add + one mul here.
        e = e + add_mask
        m = jnp.max(e, axis=-1, keepdims=True)
        p = jnp.exp(e - m) * mult_mask
        denom = jnp.sum(p, axis=-1, keepdims=True) + 1e-16
        return p / denom

    # --------------- conv1: GATConv(F_in, C, heads=H) + ReLU -------------------
    h1 = mm(x_ref[...], blk('w1', f_in, H * C))                          # (N, H*C)
    # both per-head logit projections in ONE block-diagonal matmul
    a1 = mm(h1, blk('att1', H * C, 2 * H))                               # (N, 2H)
    a_src1_t = a1[:, :H].T                                               # (H, N)
    a_dst1 = a1[:, H:2 * H]                                              # (N, H)

    for hd in range(H):
        e1 = a_dst1[:, hd:hd + 1] + a_src1_t[hd:hd + 1, :]               # (N, N)
        e1 = jnp.where(e1 > 0.0, e1, _LEAKY_SLOPE * e1)                  # leaky_relu
        attn = masked_softmax(e1)
        acc_ref[:, hd * C:(hd + 1) * C] = mm(attn, h1[:, hd * C:(hd + 1) * C])

    x1 = jnp.maximum(acc_ref[...] + blk('bias1', 1, H * C), 0.0)         # bias + ReLU
    # F.dropout(p=0.6) is identity at eval time.

    # --------------- conv2: GATConv(H*C, hidden, heads=1) ----------------------
    h2 = mm(x1, blk('w2', H * C, hid))                                   # (N, hid)
    a2 = mm(h2, blk('att2', hid, 2))                                     # (N, 2): [src|dst]
    e2 = a2[:, 1:2] + a2[:, 0:1].T                                       # (N, N)
    e2 = jnp.where(e2 > 0.0, e2, _LEAKY_SLOPE * e2)
    attn2 = masked_softmax(e2)                                           # (N, N)
    x2 = mm(attn2, h2) + blk('bias2', 1, hid)                            # (N, hid)

    # per-edge attention coefficients, lane-dense: alpha[e] = attn2[dst[e], src[e]]
    gathered = mm(attn2, src_oh)                                         # (N, E)
    alpha_ref[...] = jnp.sum(gathered * dst_oh, axis=0, keepdims=True)   # (1, E)

    # --------------- global_mean_pool + MLP head --------------------------------
    pooled = mm(blk('pool', G, n), x2)                                   # (G, hid)
    z = jnp.maximum(mm(pooled, blk('fc_w1', hid, hid // 2))
                    + blk('fc_b1', 1, hid // 2), 0.0)
    z = jnp.maximum(mm(z, blk('fc_w2', hid // 2, hid // 4))
                    + blk('fc_b2', 1, hid // 4), 0.0)
    logits_ref[...] = mm(z, blk('fc_w3', hid // 4, out_dim)) + blk('fc_b3', 1, out_dim)


# ----------------------------------------------------------------------------
# Wrapper
# ----------------------------------------------------------------------------

def _block_diag_att(att):
    """(heads, C) attention vectors -> (heads*C, heads) block-diagonal projection."""
    h, c = att.shape
    eye = jnp.eye(h, dtype=att.dtype)
    return (att[:, :, None] * eye[:, None, :]).reshape(h * c, h)


def _pack_params(blocks):
    """Pack small 2-D f32 tensors into one lane-padded slab.  Row offsets are
    multiples of 8 so in-kernel static slices stay sublane-aligned."""
    lane_w = max(arr.shape[1] for _, arr in blocks)
    lane_w = ((lane_w + 127) // 128) * 128
    offsets, rows, off = {}, [], 0
    for name, arr in blocks:
        r, c = arr.shape
        r_pad = ((r + 7) // 8) * 8
        offsets[name] = off
        padded = jnp.zeros((r_pad, lane_w), jnp.float32)
        padded = padded.at[:r, :c].set(arr.astype(jnp.float32))
        rows.append(padded)
        off += r_pad
    return jnp.concatenate(rows, axis=0), offsets


def gat_classifier_forward(params, x, edge_index, batch, num_graphs):
    """Mirrors GATClassifier.forward (eval mode). Returns (logits, alpha)."""
    # TODO(synk): for large N (esp. v7x's 64 MiB VMEM) tile the (N,N) attention over
    # dst-row blocks with a "parallel" grid axis and flash-style online softmax over
    # src tiles; at these tiny shapes a single fused, ungridded call is fastest.
    n, f_in = x.shape
    e_cnt = edge_index.shape[1]
    src = edge_index[0].astype(jnp.int32).reshape(1, e_cnt)   # lane-major edge ids
    dst = edge_index[1].astype(jnp.int32).reshape(1, e_cnt)

    # global_mean_pool as a (G, N) averaging matrix (wrapper-side glue)
    one_hot = (batch[None, :] == jnp.arange(num_graphs)[:, None]).astype(jnp.float32)
    counts = jnp.sum(one_hot, axis=1, keepdims=True)
    pool = one_hot / jnp.maximum(counts, 1.0)

    heads1, c1 = params['att_src1'].shape
    hidden = params['w2'].shape[1]
    out_dim = params['fc_w3'].shape[1]

    # pack the 13 parameter tensors + pool matrix into ONE slab -> 4 kernel inputs
    slab, offsets = _pack_params([
        ('w1', params['w1']),
        ('att1', jnp.concatenate([_block_diag_att(params['att_src1']),
                                  _block_diag_att(params['att_dst1'])], axis=1)),
        ('bias1', params['bias1']),
        ('w2', params['w2']),
        ('att2', jnp.concatenate([params['att_src2'], params['att_dst2']], axis=0).T),
        ('bias2', params['bias2']),
        ('fc_w1', params['fc_w1']), ('fc_b1', params['fc_b1']),
        ('fc_w2', params['fc_w2']), ('fc_b2', params['fc_b2']),
        ('fc_w3', params['fc_w3']), ('fc_b3', params['fc_b3']),
        ('pool', pool),
    ])

    kernel = functools.partial(
        gat_classifier_kernel, heads1=heads1, c1=c1, hidden=hidden,
        out_dim=out_dim, num_graphs=num_graphs, f_in=f_in, offsets=offsets)

    logits, alpha_row = pl.pallas_call(
        kernel,
        out_shape=(
            jax.ShapeDtypeStruct((num_graphs, out_dim), jnp.float32),
            jax.ShapeDtypeStruct((1, e_cnt), jnp.float32),   # lane-dense alpha
        ),
        in_specs=[_VMEM] * 4,
        out_specs=(_VMEM, _VMEM),
        scratch_shapes=[pltpu.VMEM((n, heads1 * c1), jnp.float32)],
        # Tiny problem: 32 MiB is ample and safe on every generation (v7x physical
        # VMEM is 64 MiB); re-derive per generation before scaling N.
        compiler_params=pltpu.CompilerParams(vmem_limit_bytes=32 * 1024 * 1024),
    )(src, dst, x, slab)
    return logits, alpha_row.reshape(e_cnt, 1)


# ----------------------------------------------------------------------------
# Deterministic parameter construction (synthetic; shapes from __init__)
# ----------------------------------------------------------------------------

def make_params(key, num_features, hidden_size, num_class, multi_label):
    keys = jax.random.split(key, 16)
    out_dim = 1 if (num_class == 2 and not multi_label) else num_class

    def nrm(k, shape, scale=0.1):
        return (scale * jax.random.normal(k, shape)).astype(jnp.float32)

    return {
        # conv1: GATConv(num_features, 8, heads=8, add_self_loops=False)
        'w1':       nrm(keys[0], (num_features, 8 * 8)),
        'att_src1': nrm(keys[1], (8, 8)),
        'att_dst1': nrm(keys[2], (8, 8)),
        'bias1':    nrm(keys[3], (1, 8 * 8)),
        # conv2: GATConv(64, hidden_size, heads=1, add_self_loops=False)
        'w2':       nrm(keys[4], (8 * 8, hidden_size)),
        'att_src2': nrm(keys[5], (1, hidden_size)),
        'att_dst2': nrm(keys[6], (1, hidden_size)),
        'bias2':    nrm(keys[7], (1, hidden_size)),
        # fc_out: Linear(h, h//2) -> ReLU -> Linear(h//2, h//4) -> ReLU -> Linear(h//4, out)
        'fc_w1': nrm(keys[8],  (hidden_size, hidden_size // 2)),
        'fc_b1': nrm(keys[9],  (1, hidden_size // 2)),
        'fc_w2': nrm(keys[10], (hidden_size // 2, hidden_size // 4)),
        'fc_b2': nrm(keys[11], (1, hidden_size // 4)),
        'fc_w3': nrm(keys[12], (hidden_size // 4, out_dim)),
        'fc_b3': nrm(keys[13], (1, out_dim)),
    }


# ----------------------------------------------------------------------------
# Main
# ----------------------------------------------------------------------------

if __name__ == "__main__":
    num_features = 16
    hidden_size = 32
    num_class = 3
    multi_label = False

    N = 16           # total nodes (2 graphs x 8 nodes)
    num_graphs = 2

    key = jax.random.PRNGKey(0)
    k_x, k_p = jax.random.split(key)

    x = jax.random.normal(k_x, (N, num_features), dtype=jnp.float32)

    # two 8-node directed ring graphs (both directions) -> E = 32 edges
    src_list, dst_list = [], []
    for g in range(num_graphs):
        base = g * 8
        for i in range(8):
            a, b = base + i, base + (i + 1) % 8
            src_list += [a, b]
            dst_list += [b, a]
    edge_index = jnp.array([src_list, dst_list], dtype=jnp.int32)   # (2, E)
    batch = jnp.array([0] * 8 + [1] * 8, dtype=jnp.int32)

    params = make_params(k_p, num_features, hidden_size, num_class, multi_label)

    logits, alpha = gat_classifier_forward(params, x, edge_index, batch, num_graphs)
    logits = jax.block_until_ready(logits)
    alpha = jax.block_until_ready(alpha)

    assert logits.shape == (num_graphs, num_class)
    assert alpha.shape == (edge_index.shape[1], 1)
    assert bool(jnp.all(jnp.isfinite(logits)))
    assert bool(jnp.all(jnp.isfinite(alpha)))

    print("KERNEL_OK")
</pallas_src>

<mosaic_0001>
module attributes {stable_mosaic.version = 11 : i64} {
  func.func @gat_classifier_kernel(%arg0: memref<1x32xi32, #tpu.memory_space<vmem>>, %arg1: memref<1x32xi32, #tpu.memory_space<vmem>>, %arg2: memref<16x16xf32, #tpu.memory_space<vmem>>, %arg3: memref<280x128xf32, #tpu.memory_space<vmem>>, %arg4: memref<2x3xf32, #tpu.memory_space<vmem>>, %arg5: memref<1x32xf32, #tpu.memory_space<vmem>>, %arg6: memref<16x64xf32, #tpu.memory_space<vmem>>) attributes {dimension_semantics = [], scalar_prefetch = 0 : i64, scratch_operands = 1 : i64, tpu.core_type = #tpu.core_type<tc>} {
    %0 = tpu.iota {dimensions = array<i32: 0>} : vector<16x32xi32>
    %c0 = arith.constant 0 : index
    %c0_0 = arith.constant 0 : index
    %1 = vector.load %arg0[%c0, %c0_0] : memref<1x32xi32, #tpu.memory_space<vmem>>, vector<1x32xi32>
    %2 = vector.broadcast %1 : vector<1x32xi32> to vector<16x32xi32>
    %3 = arith.cmpi eq, %2, %0 : vector<16x32xi32>
    %4 = arith.extui %3 : vector<16x32xi1> to vector<16x32xi32>
    %5 = arith.sitofp %4 : vector<16x32xi32> to vector<16x32xf32>
    %c0_1 = arith.constant 0 : index
    %c0_2 = arith.constant 0 : index
    %6 = vector.load %arg1[%c0_1, %c0_2] : memref<1x32xi32, #tpu.memory_space<vmem>>, vector<1x32xi32>
    %7 = vector.broadcast %6 : vector<1x32xi32> to vector<16x32xi32>
    %8 = arith.cmpi eq, %7, %0 : vector<16x32xi32>
    %9 = arith.extui %8 : vector<16x32xi1> to vector<16x32xi32>
    %10 = arith.sitofp %9 : vector<16x32xi32> to vector<16x32xf32>
    %cst = arith.constant dense<0.000000e+00> : vector<16x16xf32>
    %11 = tpu.matmul %10, %5, %cst {dimension_numbers = #tpu.dot_dimension_numbers<[1], [1], [0], [0], [0, 0, 1, 0], [], []>} : vector<16x32xf32>, vector<16x32xf32>, vector<16x16xf32> -> vector<16x16xf32>
    %cst_3 = arith.constant 0.000000e+00 : f32
    %12 = vector.broadcast %cst_3 : f32 to vector<16x16xf32>
    %13 = arith.cmpf ogt, %11, %12 : vector<16x16xf32>
    %14 = arith.extui %13 : vector<16x16xi1> to vector<16x16xi32>
    %15 = arith.sitofp %14 : vector<16x16xi32> to vector<16x16xf32>
    %cst_4 = arith.constant 0.000000e+00 : f32
    %16 = vector.broadcast %cst_4 : f32 to vector<16x16xf32>
    %17 = arith.cmpf ogt, %11, %16 : vector<16x16xf32>
    %cst_5 = arith.constant 0.000000e+00 : f32
    %cst_6 = arith.constant -1.000000e+30 : f32
    %18 = vector.broadcast %cst_5 : f32 to vector<16x16xf32>
    %19 = vector.broadcast %cst_6 : f32 to vector<16x16xf32>
    %20 = arith.select %17, %18, %19 : vector<16x16xi1>, vector<16x16xf32>
    %c0_7 = arith.constant 0 : index
    %c0_8 = arith.constant 0 : index
    %21 = vector.load %arg2[%c0_7, %c0_8] : memref<16x16xf32, #tpu.memory_space<vmem>>, vector<16x16xf32>
    %c0_9 = arith.constant 0 : index
    %c0_10 = arith.constant 0 : index
    %22 = vector.load %arg3[%c0_9, %c0_10] : memref<280x128xf32, #tpu.memory_space<vmem>>, vector<16x64xf32>
    %cst_11 = arith.constant dense<0.000000e+00> : vector<16x64xf32>
    %23 = tpu.matmul %21, %22, %cst_11 {dimension_numbers = #tpu.dot_dimension_numbers<[1], [0], [0], [1], [0, 0, 1, 1], [], []>} : vector<16x16xf32>, vector<16x64xf32>, vector<16x64xf32> -> vector<16x64xf32>
    %c16 = arith.constant 16 : index
    %c0_12 = arith.constant 0 : index
    %24 = vector.load %arg3[%c16, %c0_12] : memref<280x128xf32, #tpu.memory_space<vmem>>, vector<64x16xf32>
    %cst_13 = arith.constant dense<0.000000e+00> : vector<16x16xf32>
    %25 = tpu.matmul %23, %24, %cst_13 {dimension_numbers = #tpu.dot_dimension_numbers<[1], [0], [0], [1], [0, 0, 1, 1], [], []>} : vector<16x64xf32>, vector<64x16xf32>, vector<16x16xf32> -> vector<16x16xf32>
    %26 = vector.extract_strided_slice %25 {offsets = [0, 0], sizes = [16, 8], strides = [1, 1]} : vector<16x16xf32> to vector<16x8xf32>
    %27 = tpu.transpose %26, [1, 0] : vector<16x8xf32> -> vector<8x16xf32>
    %28 = vector.extract_strided_slice %25 {offsets = [0, 8], sizes = [16, 8], strides = [1, 1]} : vector<16x16xf32> to vector<16x8xf32>
    %29 = vector.extract_strided_slice %28 {offsets = [0, 0], sizes = [16, 1], strides = [1, 1]} : vector<16x8xf32> to vector<16x1xf32>
    %30 = vector.extract_strided_slice %27 {offsets = [0, 0], sizes = [1, 16], strides = [1, 1]} : vector<8x16xf32> to vector<1x16xf32>
    %31 = vector.broadcast %29 : vector<16x1xf32> to vector<16x16xf32>
    %32 = vector.broadcast %30 : vector<1x16xf32> to vector<16x16xf32>
    %33 = arith.addf %31, %32 : vector<16x16xf32>
    %cst_14 = arith.constant 0.000000e+00 : f32
    %34 = vector.broadcast %cst_14 : f32 to vector<16x16xf32>
    %35 = arith.cmpf ogt, %33, %34 : vector<16x16xf32>
    %cst_15 = arith.constant 2.000000e-01 : f32
    %36 = vector.broadcast %cst_15 : f32 to vector<16x16xf32>
    %37 = arith.mulf %36, %33 : vector<16x16xf32>
    %38 = arith.select %35, %33, %37 : vector<16x16xi1>, vector<16x16xf32>
    %39 = arith.addf %38, %20 : vector<16x16xf32>
    %cst_16 = arith.constant dense<0xFF800000> : vector<16xf32>
    %40 = vector.multi_reduction <maximumf>, %39, %cst_16 [1] : vector<16x16xf32> to vector<16xf32>
    %41 = vector.shape_cast %40 : vector<16xf32> to vector<16x1xf32>
    %42 = vector.broadcast %41 : vector<16x1xf32> to vector<16x16xf32>
    %43 = arith.subf %39, %42 : vector<16x16xf32>
    %44 = math.exp %43 : vector<16x16xf32>
    %45 = arith.mulf %44, %15 : vector<16x16xf32>
    %cst_17 = arith.constant dense<0.000000e+00> : vector<16xf32>
    %46 = vector.multi_reduction <add>, %45, %cst_17 [1] : vector<16x16xf32> to vector<16xf32>
    %47 = vector.shape_cast %46 : vector<16xf32> to vector<16x1xf32>
    %cst_18 = arith.constant 1.000000e-16 : f32
    %48 = vector.broadcast %cst_18 : f32 to vector<16x1xf32>
    %49 = arith.addf %47, %48 : vector<16x1xf32>
    %50 = vector.broadcast %49 : vector<16x1xf32> to vector<16x16xf32>
    %51 = arith.divf %45, %50 : vector<16x16xf32>
    %52 = vector.extract_strided_slice %23 {offsets = [0, 0], sizes = [16, 8], strides = [1, 1]} : vector<16x64xf32> to vector<16x8xf32>
    %cst_19 = arith.constant dense<0.000000e+00> : vector<16x8xf32>
    %53 = tpu.matmul %51, %52, %cst_19 {dimension_numbers = #tpu.dot_dimension_numbers<[1], [0], [0], [1], [0, 0, 1, 1], [], []>} : vector<16x16xf32>, vector<16x8xf32>, vector<16x8xf32> -> vector<16x8xf32>
    %c0_20 = arith.constant 0 : index
    %c0_21 = arith.constant 0 : index
    %54 = vector.load %arg6[%c0_20, %c0_21] : memref<16x64xf32, #tpu.memory_space<vmem>>, vector<16x8xf32>
    tpu.vector_store %arg6[%c0_20, %c0_21], %53 {strides = array<i32>} : memref<16x64xf32, #tpu.memory_space<vmem>>, vector<16x8xf32>,
    %55 = vector.extract_strided_slice %28 {offsets = [0, 1], sizes = [16, 1], strides = [1, 1]} : vector<16x8xf32> to vector<16x1xf32>
    %56 = vector.extract_strided_slice %27 {offsets = [1, 0], sizes = [1, 16], strides = [1, 1]} : vector<8x16xf32> to vector<1x16xf32>
    %57 = vector.broadcast %55 : vector<16x1xf32> to vector<16x16xf32>
    %58 = vector.broadcast %56 : vector<1x16xf32> to vector<16x16xf32>
    %59 = arith.addf %57, %58 : vector<16x16xf32>
    %cst_22 = arith.constant 0.000000e+00 : f32
    %60 = vector.broadcast %cst_22 : f32 to vector<16x16xf32>
    %61 = arith.cmpf ogt, %59, %60 : vector<16x16xf32>
    %cst_23 = arith.constant 2.000000e-01 : f32
    %62 = vector.broadcast %cst_23 : f32 to vector<16x16xf32>
    %63 = arith.mulf %62, %59 : vector<16x16xf32>
    %64 = arith.select %61, %59, %63 : vector<16x16xi1>, vector<16x16xf32>
    %65 = arith.addf %64, %20 : vector<16x16xf32>
    %cst_24 = arith.constant dense<0xFF800000> : vector<16xf32>
    %66 = vector.multi_reduction <maximumf>, %65, %cst_24 [1] : vector<16x16xf32> to vector<16xf32>
    %67 = vector.shape_cast %66 : vector<16xf32> to vector<16x1xf32>
    %68 = vector.broadcast %67 : vector<16x1xf32> to vector<16x16xf32>
    %69 = arith.subf %65, %68 : vector<16x16xf32>
    %70 = math.exp %69 : vector<16x16xf32>
    %71 = arith.mulf %70, %15 : vector<16x16xf32>
    %cst_25 = arith.constant dense<0.000000e+00> : vector<16xf32>
    %72 = vector.multi_reduction <add>, %71, %cst_25 [1] : vector<16x16xf32> to vector<16xf32>
    %73 = vector.shape_cast %72 : vector<16xf32> to vector<16x1xf32>
    %cst_26 = arith.constant 1.000000e-16 : f32
    %74 = vector.broadcast %cst_26 : f32 to vector<16x1xf32>
    %75 = arith.addf %73, %74 : vector<16x1xf32>
    %76 = vector.broadcast %75 : vector<16x1xf32> to vector<16x16xf32>
    %77 = arith.divf %71, %76 : vector<16x16xf32>
    %78 = vector.extract_strided_slice %23 {offsets = [0, 8], sizes = [16, 8], strides = [1, 1]} : vector<16x64xf32> to vector<16x8xf32>
    %cst_27 = arith.constant dense<0.000000e+00> : vector<16x8xf32>
    %79 = tpu.matmul %77, %78, %cst_27 {dimension_numbers = #tpu.dot_dimension_numbers<[1], [0], [0], [1], [0, 0, 1, 1], [], []>} : vector<16x16xf32>, vector<16x8xf32>, vector<16x8xf32> -> vector<16x8xf32>
    %c0_28 = arith.constant 0 : index
    %c8 = arith.constant 8 : index
    %80 = vector.load %arg6[%c0_28, %c8] : memref<16x64xf32, #tpu.memory_space<vmem>>, vector<16x8xf32>
    tpu.vector_store %arg6[%c0_28, %c8], %79 {strides = array<i32>} : memref<16x64xf32, #tpu.memory_space<vmem>>, vector<16x8xf32>,
    %81 = vector.extract_strided_slice %28 {offsets = [0, 2], sizes = [16, 1], strides = [1, 1]} : vector<16x8xf32> to vector<16x1xf32>
    %82 = vector.extract_strided_slice %27 {offsets = [2, 0], sizes = [1, 16], strides = [1, 1]} : vector<8x16xf32> to vector<1x16xf32>
    %83 = vector.broadcast %81 : vector<16x1xf32> to vector<16x16xf32>
    %84 = vector.broadcast %82 : vector<1x16xf32> to vector<16x16xf32>
    %85 = arith.addf %83, %84 : vector<16x16xf32>
    %cst_29 = arith.constant 0.000000e+00 : f32
    %86 = vector.broadcast %cst_29 : f32 to vector<16x16xf32>
    %87 = arith.cmpf ogt, %85, %86 : vector<16x16xf32>
    %cst_30 = arith.constant 2.000000e-01 : f32
    %88 = vector.broadcast %cst_30 : f32 to vector<16x16xf32>
    %89 = arith.mulf %88, %85 : vector<16x16xf32>
    %90 = arith.select %87, %85, %89 : vector<16x16xi1>, vector<16x16xf32>
    %91 = arith.addf %90, %20 : vector<16x16xf32>
    %cst_31 = arith.constant dense<0xFF800000> : vector<16xf32>
    %92 = vector.multi_reduction <maximumf>, %91, %cst_31 [1] : vector<16x16xf32> to vector<16xf32>
    %93 = vector.shape_cast %92 : vector<16xf32> to vector<16x1xf32>
    %94 = vector.broadcast %93 : vector<16x1xf32> to vector<16x16xf32>
    %95 = arith.subf %91, %94 : vector<16x16xf32>
    %96 = math.exp %95 : vector<16x16xf32>
    %97 = arith.mulf %96, %15 : vector<16x16xf32>
    %cst_32 = arith.constant dense<0.000000e+00> : vector<16xf32>
    %98 = vector.multi_reduction <add>, %97, %cst_32 [1] : vector<16x16xf32> to vector<16xf32>
    %99 = vector.shape_cast %98 : vector<16xf32> to vector<16x1xf32>
    %cst_33 = arith.constant 1.000000e-16 : f32
    %100 = vector.broadcast %cst_33 : f32 to vector<16x1xf32>
    %101 = arith.addf %99, %100 : vector<16x1xf32>
    %102 = vector.broadcast %101 : vector<16x1xf32> to vector<16x16xf32>
    %103 = arith.divf %97, %102 : vector<16x16xf32>
    %104 = vector.extract_strided_slice %23 {offsets = [0, 16], sizes = [16, 8], strides = [1, 1]} : vector<16x64xf32> to vector<16x8xf32>
    %cst_34 = arith.constant dense<0.000000e+00> : vector<16x8xf32>
    %105 = tpu.matmul %103, %104, %cst_34 {dimension_numbers = #tpu.dot_dimension_numbers<[1], [0], [0], [1], [0, 0, 1, 1], [], []>} : vector<16x16xf32>, vector<16x8xf32>, vector<16x8xf32> -> vector<16x8xf32>
    %c0_35 = arith.constant 0 : index
    %c16_36 = arith.constant 16 : index
    %106 = vector.load %arg6[%c0_35, %c16_36] : memref<16x64xf32, #tpu.memory_space<vmem>>, vector<16x8xf32>
    tpu.vector_store %arg6[%c0_35, %c16_36], %105 {strides = array<i32>} : memref<16x64xf32, #tpu.memory_space<vmem>>, vector<16x8xf32>,
    %107 = vector.extract_strided_slice %28 {offsets = [0, 3], sizes = [16, 1], strides = [1, 1]} : vector<16x8xf32> to vector<16x1xf32>
    %108 = vector.extract_strided_slice %27 {offsets = [3, 0], sizes = [1, 16], strides = [1, 1]} : vector<8x16xf32> to vector<1x16xf32>
    %109 = vector.broadcast %107 : vector<16x1xf32> to vector<16x16xf32>
    %110 = vector.broadcast %108 : vector<1x16xf32> to vector<16x16xf32>
    %111 = arith.addf %109, %110 : vector<16x16xf32>
    %cst_37 = arith.constant 0.000000e+00 : f32
    %112 = vector.broadcast %cst_37 : f32 to vector<16x16xf32>
    %113 = arith.cmpf ogt, %111, %112 : vector<16x16xf32>
    %cst_38 = arith.constant 2.000000e-01 : f32
    %114 = vector.broadcast %cst_38 : f32 to vector<16x16xf32>
    %115 = arith.mulf %114, %111 : vector<16x16xf32>
    %116 = arith.select %113, %111, %115 : vector<16x16xi1>, vector<16x16xf32>
    %117 = arith.addf %116, %20 : vector<16x16xf32>
    %cst_39 = arith.constant dense<0xFF800000> : vector<16xf32>
    %118 = vector.multi_reduction <maximumf>, %117, %cst_39 [1] : vector<16x16xf32> to vector<16xf32>
    %119 = vector.shape_cast %118 : vector<16xf32> to vector<16x1xf32>
    %120 = vector.broadcast %119 : vector<16x1xf32> to vector<16x16xf32>
    %121 = arith.subf %117, %120 : vector<16x16xf32>
    %122 = math.exp %121 : vector<16x16xf32>
    %123 = arith.mulf %122, %15 : vector<16x16xf32>
    %cst_40 = arith.constant dense<0.000000e+00> : vector<16xf32>
    %124 = vector.multi_reduction <add>, %123, %cst_40 [1] : vector<16x16xf32> to vector<16xf32>
    %125 = vector.shape_cast %124 : vector<16xf32> to vector<16x1xf32>
    %cst_41 = arith.constant 1.000000e-16 : f32
    %126 = vector.broadcast %cst_41 : f32 to vector<16x1xf32>
    %127 = arith.addf %125, %126 : vector<16x1xf32>
    %128 = vector.broadcast %127 : vector<16x1xf32> to vector<16x16xf32>
    %129 = arith.divf %123, %128 : vector<16x16xf32>
    %130 = vector.extract_strided_slice %23 {offsets = [0, 24], sizes = [16, 8], strides = [1, 1]} : vector<16x64xf32> to vector<16x8xf32>
    %cst_42 = arith.constant dense<0.000000e+00> : vector<16x8xf32>
    %131 = tpu.matmul %129, %130, %cst_42 {dimension_numbers = #tpu.dot_dimension_numbers<[1], [0], [0], [1], [0, 0, 1, 1], [], []>} : vector<16x16xf32>, vector<16x8xf32>, vector<16x8xf32> -> vector<16x8xf32>
    %c0_43 = arith.constant 0 : index
    %c24 = arith.constant 24 : index
    %132 = vector.load %arg6[%c0_43, %c24] : memref<16x64xf32, #tpu.memory_space<vmem>>, vector<16x8xf32>
    tpu.vector_store %arg6[%c0_43, %c24], %131 {strides = array<i32>} : memref<16x64xf32, #tpu.memory_space<vmem>>, vector<16x8xf32>,
    %133 = vector.extract_strided_slice %28 {offsets = [0, 4], sizes = [16, 1], strides = [1, 1]} : vector<16x8xf32> to vector<16x1xf32>
    %134 = vector.extract_strided_slice %27 {offsets = [4, 0], sizes = [1, 16], strides = [1, 1]} : vector<8x16xf32> to vector<1x16xf32>
    %135 = vector.broadcast %133 : vector<16x1xf32> to vector<16x16xf32>
    %136 = vector.broadcast %134 : vector<1x16xf32> to vector<16x16xf32>
    %137 = arith.addf %135, %136 : vector<16x16xf32>
    %cst_44 = arith.constant 0.000000e+00 : f32
    %138 = vector.broadcast %cst_44 : f32 to vector<16x16xf32>
    %139 = arith.cmpf ogt, %137, %138 : vector<16x16xf32>
    %cst_45 = arith.constant 2.000000e-01 : f32
    %140 = vector.broadcast %cst_45 : f32 to vector<16x16xf32>
    %141 = arith.mulf %140, %137 : vector<16x16xf32>
    %142 = arith.select %139, %137, %141 : vector<16x16xi1>, vector<16x16xf32>
    %143 = arith.addf %142, %20 : vector<16x16xf32>
    %cst_46 = arith.constant dense<0xFF800000> : vector<16xf32>
    %144 = vector.multi_reduction <maximumf>, %143, %cst_46 [1] : vector<16x16xf32> to vector<16xf32>
    %145 = vector.shape_cast %144 : vector<16xf32> to vector<16x1xf32>
    %146 = vector.broadcast %145 : vector<16x1xf32> to vector<16x16xf32>
    %147 = arith.subf %143, %146 : vector<16x16xf32>
    %148 = math.exp %147 : vector<16x16xf32>
    %149 = arith.mulf %148, %15 : vector<16x16xf32>
    %cst_47 = arith.constant dense<0.000000e+00> : vector<16xf32>
    %150 = vector.multi_reduction <add>, %149, %cst_47 [1] : vector<16x16xf32> to vector<16xf32>
    %151 = vector.shape_cast %150 : vector<16xf32> to vector<16x1xf32>
    %cst_48 = arith.constant 1.000000e-16 : f32
    %152 = vector.broadcast %cst_48 : f32 to vector<16x1xf32>
    %153 = arith.addf %151, %152 : vector<16x1xf32>
    %154 = vector.broadcast %153 : vector<16x1xf32> to vector<16x16xf32>
    %155 = arith.divf %149, %154 : vector<16x16xf32>
    %156 = vector.extract_strided_slice %23 {offsets = [0, 32], sizes = [16, 8], strides = [1, 1]} : vector<16x64xf32> to vector<16x8xf32>
    %cst_49 = arith.constant dense<0.000000e+00> : vector<16x8xf32>
    %157 = tpu.matmul %155, %156, %cst_49 {dimension_numbers = #tpu.dot_dimension_numbers<[1], [0], [0], [1], [0, 0, 1, 1], [], []>} : vector<16x16xf32>, vector<16x8xf32>, vector<16x8xf32> -> vector<16x8xf32>
    %c0_50 = arith.constant 0 : index
    %c32 = arith.constant 32 : index
    %158 = vector.load %arg6[%c0_50, %c32] : memref<16x64xf32, #tpu.memory_space<vmem>>, vector<16x8xf32>
    tpu.vector_store %arg6[%c0_50, %c32], %157 {strides = array<i32>} : memref<16x64xf32, #tpu.memory_space<vmem>>, vector<16x8xf32>,
    %159 = vector.extract_strided_slice %28 {offsets = [0, 5], sizes = [16, 1], strides = [1, 1]} : vector<16x8xf32> to vector<16x1xf32>
    %160 = vector.extract_strided_slice %27 {offsets = [5, 0], sizes = [1, 16], strides = [1, 1]} : vector<8x16xf32> to vector<1x16xf32>
    %161 = vector.broadcast %159 : vector<16x1xf32> to vector<16x16xf32>
    %162 = vector.broadcast %160 : vector<1x16xf32> to vector<16x16xf32>
    %163 = arith.addf %161, %162 : vector<16x16xf32>
    %cst_51 = arith.constant 0.000000e+00 : f32
    %164 = vector.broadcast %cst_51 : f32 to vector<16x16xf32>
    %165 = arith.cmpf ogt, %163, %164 : vector<16x16xf32>
    %cst_52 = arith.constant 2.000000e-01 : f32
    %166 = vector.broadcast %cst_52 : f32 to vector<16x16xf32>
    %167 = arith.mulf %166, %163 : vector<16x16xf32>
    %168 = arith.select %165, %163, %167 : vector<16x16xi1>, vector<16x16xf32>
    %169 = arith.addf %168, %20 : vector<16x16xf32>
    %cst_53 = arith.constant dense<0xFF800000> : vector<16xf32>
    %170 = vector.multi_reduction <maximumf>, %169, %cst_53 [1] : vector<16x16xf32> to vector<16xf32>
    %171 = vector.shape_cast %170 : vector<16xf32> to vector<16x1xf32>
    %172 = vector.broadcast %171 : vector<16x1xf32> to vector<16x16xf32>
    %173 = arith.subf %169, %172 : vector<16x16xf32>
    %174 = math.exp %173 : vector<16x16xf32>
    %175 = arith.mulf %174, %15 : vector<16x16xf32>
    %cst_54 = arith.constant dense<0.000000e+00> : vector<16xf32>
    %176 = vector.multi_reduction <add>, %175, %cst_54 [1] : vector<16x16xf32> to vector<16xf32>
    %177 = vector.shape_cast %176 : vector<16xf32> to vector<16x1xf32>
    %cst_55 = arith.constant 1.000000e-16 : f32
    %178 = vector.broadcast %cst_55 : f32 to vector<16x1xf32>
    %179 = arith.addf %177, %178 : vector<16x1xf32>
    %180 = vector.broadcast %179 : vector<16x1xf32> to vector<16x16xf32>
    %181 = arith.divf %175, %180 : vector<16x16xf32>
    %182 = vector.extract_strided_slice %23 {offsets = [0, 40], sizes = [16, 8], strides = [1, 1]} : vector<16x64xf32> to vector<16x8xf32>
    %cst_56 = arith.constant dense<0.000000e+00> : vector<16x8xf32>
    %183 = tpu.matmul %181, %182, %cst_56 {dimension_numbers = #tpu.dot_dimension_numbers<[1], [0], [0], [1], [0, 0, 1, 1], [], []>} : vector<16x16xf32>, vector<16x8xf32>, vector<16x8xf32> -> vector<16x8xf32>
    %c0_57 = arith.constant 0 : index
    %c40 = arith.constant 40 : index
    %184 = vector.load %arg6[%c0_57, %c40] : memref<16x64xf32, #tpu.memory_space<vmem>>, vector<16x8xf32>
    tpu.vector_store %arg6[%c0_57, %c40], %183 {strides = array<i32>} : memref<16x64xf32, #tpu.memory_space<vmem>>, vector<16x8xf32>,
    %185 = vector.extract_strided_slice %28 {offsets = [0, 6], sizes = [16, 1], strides = [1, 1]} : vector<16x8xf32> to vector<16x1xf32>
    %186 = vector.extract_strided_slice %27 {offsets = [6, 0], sizes = [1, 16], strides = [1, 1]} : vector<8x16xf32> to vector<1x16xf32>
    %187 = vector.broadcast %185 : vector<16x1xf32> to vector<16x16xf32>
    %188 = vector.broadcast %186 : vector<1x16xf32> to vector<16x16xf32>
    %189 = arith.addf %187, %188 : vector<16x16xf32>
    %cst_58 = arith.constant 0.000000e+00 : f32
    %190 = vector.broadcast %cst_58 : f32 to vector<16x16xf32>
    %191 = arith.cmpf ogt, %189, %190 : vector<16x16xf32>
    %cst_59 = arith.constant 2.000000e-01 : f32
    %192 = vector.broadcast %cst_59 : f32 to vector<16x16xf32>
    %193 = arith.mulf %192, %189 : vector<16x16xf32>
    %194 = arith.select %191, %189, %193 : vector<16x16xi1>, vector<16x16xf32>
    %195 = arith.addf %194, %20 : vector<16x16xf32>
    %cst_60 = arith.constant dense<0xFF800000> : vector<16xf32>
    %196 = vector.multi_reduction <maximumf>, %195, %cst_60 [1] : vector<16x16xf32> to vector<16xf32>
    %197 = vector.shape_cast %196 : vector<16xf32> to vector<16x1xf32>
    %198 = vector.broadcast %197 : vector<16x1xf32> to vector<16x16xf32>
    %199 = arith.subf %195, %198 : vector<16x16xf32>
    %200 = math.exp %199 : vector<16x16xf32>
    %201 = arith.mulf %200, %15 : vector<16x16xf32>
    %cst_61 = arith.constant dense<0.000000e+00> : vector<16xf32>
    %202 = vector.multi_reduction <add>, %201, %cst_61 [1] : vector<16x16xf32> to vector<16xf32>
    %203 = vector.shape_cast %202 : vector<16xf32> to vector<16x1xf32>
    %cst_62 = arith.constant 1.000000e-16 : f32
    %204 = vector.broadcast %cst_62 : f32 to vector<16x1xf32>
    %205 = arith.addf %203, %204 : vector<16x1xf32>
    %206 = vector.broadcast %205 : vector<16x1xf32> to vector<16x16xf32>
    %207 = arith.divf %201, %206 : vector<16x16xf32>
    %208 = vector.extract_strided_slice %23 {offsets = [0, 48], sizes = [16, 8], strides = [1, 1]} : vector<16x64xf32> to vector<16x8xf32>
    %cst_63 = arith.constant dense<0.000000e+00> : vector<16x8xf32>
    %209 = tpu.matmul %207, %208, %cst_63 {dimension_numbers = #tpu.dot_dimension_numbers<[1], [0], [0], [1], [0, 0, 1, 1], [], []>} : vector<16x16xf32>, vector<16x8xf32>, vector<16x8xf32> -> vector<16x8xf32>
    %c0_64 = arith.constant 0 : index
    %c48 = arith.constant 48 : index
    %210 = vector.load %arg6[%c0_64, %c48] : memref<16x64xf32, #tpu.memory_space<vmem>>, vector<16x8xf32>
    tpu.vector_store %arg6[%c0_64, %c48], %209 {strides = array<i32>} : memref<16x64xf32, #tpu.memory_space<vmem>>, vector<16x8xf32>,
    %211 = vector.extract_strided_slice %28 {offsets = [0, 7], sizes = [16, 1], strides = [1, 1]} : vector<16x8xf32> to vector<16x1xf32>
    %212 = vector.extract_strided_slice %27 {offsets = [7, 0], sizes = [1, 16], strides = [1, 1]} : vector<8x16xf32> to vector<1x16xf32>
    %213 = vector.broadcast %211 : vector<16x1xf32> to vector<16x16xf32>
    %214 = vector.broadcast %212 : vector<1x16xf32> to vector<16x16xf32>
    %215 = arith.addf %213, %214 : vector<16x16xf32>
    %cst_65 = arith.constant 0.000000e+00 : f32
    %216 = vector.broadcast %cst_65 : f32 to vector<16x16xf32>
    %217 = arith.cmpf ogt, %215, %216 : vector<16x16xf32>
    %cst_66 = arith.constant 2.000000e-01 : f32
    %218 = vector.broadcast %cst_66 : f32 to vector<16x16xf32>
    %219 = arith.mulf %218, %215 : vector<16x16xf32>
    %220 = arith.select %217, %215, %219 : vector<16x16xi1>, vector<16x16xf32>
    %221 = arith.addf %220, %20 : vector<16x16xf32>
    %cst_67 = arith.constant dense<0xFF800000> : vector<16xf32>
    %222 = vector.multi_reduction <maximumf>, %221, %cst_67 [1] : vector<16x16xf32> to vector<16xf32>
    %223 = vector.shape_cast %222 : vector<16xf32> to vector<16x1xf32>
    %224 = vector.broadcast %223 : vector<16x1xf32> to vector<16x16xf32>
    %225 = arith.subf %221, %224 : vector<16x16xf32>
    %226 = math.exp %225 : vector<16x16xf32>
    %227 = arith.mulf %226, %15 : vector<16x16xf32>
    %cst_68 = arith.constant dense<0.000000e+00> : vector<16xf32>
    %228 = vector.multi_reduction <add>, %227, %cst_68 [1] : vector<16x16xf32> to vector<16xf32>
    %229 = vector.shape_cast %228 : vector<16xf32> to vector<16x1xf32>
    %cst_69 = arith.constant 1.000000e-16 : f32
    %230 = vector.broadcast %cst_69 : f32 to vector<16x1xf32>
    %231 = arith.addf %229, %230 : vector<16x1xf32>
    %232 = vector.broadcast %231 : vector<16x1xf32> to vector<16x16xf32>
    %233 = arith.divf %227, %232 : vector<16x16xf32>
    %234 = vector.extract_strided_slice %23 {offsets = [0, 56], sizes = [16, 8], strides = [1, 1]} : vector<16x64xf32> to vector<16x8xf32>
    %cst_70 = arith.constant dense<0.000000e+00> : vector<16x8xf32>
    %235 = tpu.matmul %233, %234, %cst_70 {dimension_numbers = #tpu.dot_dimension_numbers<[1], [0], [0], [1], [0, 0, 1, 1], [], []>} : vector<16x16xf32>, vector<16x8xf32>, vector<16x8xf32> -> vector<16x8xf32>
    %c0_71 = arith.constant 0 : index
    %c56 = arith.constant 56 : index
    %236 = vector.load %arg6[%c0_71, %c56] : memref<16x64xf32, #tpu.memory_space<vmem>>, vector<16x8xf32>
    tpu.vector_store %arg6[%c0_71, %c56], %235 {strides = array<i32>} : memref<16x64xf32, #tpu.memory_space<vmem>>, vector<16x8xf32>,
    %c0_72 = arith.constant 0 : index
    %c0_73 = arith.constant 0 : index
    %237 = vector.load %arg6[%c0_72, %c0_73] : memref<16x64xf32, #tpu.memory_space<vmem>>, vector<16x64xf32>
    %c80 = arith.constant 80 : index
    %c0_74 = arith.constant 0 : index
    %238 = vector.load %arg3[%c80, %c0_74] : memref<280x128xf32, #tpu.memory_space<vmem>>, vector<1x64xf32>
    %239 = vector.broadcast %238 : vector<1x64xf32> to vector<16x64xf32>
    %240 = arith.addf %237, %239 : vector<16x64xf32>
    %cst_75 = arith.constant 0.000000e+00 : f32
    %241 = vector.broadcast %cst_75 : f32 to vector<16x64xf32>
    %242 = arith.maximumf %240, %241 : vector<16x64xf32>
    %c88 = arith.constant 88 : index
    %c0_76 = arith.constant 0 : index
    %243 = vector.load %arg3[%c88, %c0_76] : memref<280x128xf32, #tpu.memory_space<vmem>>, vector<64x32xf32>
    %cst_77 = arith.constant dense<0.000000e+00> : vector<16x32xf32>
    %244 = tpu.matmul %242, %243, %cst_77 {dimension_numbers = #tpu.dot_dimension_numbers<[1], [0], [0], [1], [0, 0, 1, 1], [], []>} : vector<16x64xf32>, vector<64x32xf32>, vector<16x32xf32> -> vector<16x32xf32>
    %c152 = arith.constant 152 : index
    %c0_78 = arith.constant 0 : index
    %245 = vector.load %arg3[%c152, %c0_78] : memref<280x128xf32, #tpu.memory_space<vmem>>, vector<32x2xf32>
    %cst_79 = arith.constant dense<0.000000e+00> : vector<16x2xf32>
    %246 = tpu.matmul %244, %245, %cst_79 {dimension_numbers = #tpu.dot_dimension_numbers<[1], [0], [0], [1], [0, 0, 1, 1], [], []>} : vector<16x32xf32>, vector<32x2xf32>, vector<16x2xf32> -> vector<16x2xf32>
    %247 = vector.extract_strided_slice %246 {offsets = [0, 1], sizes = [16, 1], strides = [1, 1]} : vector<16x2xf32> to vector<16x1xf32>
    %248 = vector.extract_strided_slice %246 {offsets = [0, 0], sizes = [16, 1], strides = [1, 1]} : vector<16x2xf32> to vector<16x1xf32>
    %249 = tpu.transpose %248, [1, 0] : vector<16x1xf32> -> vector<1x16xf32>
    %250 = vector.broadcast %247 : vector<16x1xf32> to vector<16x16xf32>
    %251 = vector.broadcast %249 : vector<1x16xf32> to vector<16x16xf32>
    %252 = arith.addf %250, %251 : vector<16x16xf32>
    %cst_80 = arith.constant 0.000000e+00 : f32
    %253 = vector.broadcast %cst_80 : f32 to vector<16x16xf32>
    %254 = arith.cmpf ogt, %252, %253 : vector<16x16xf32>
    %cst_81 = arith.constant 2.000000e-01 : f32
    %255 = vector.broadcast %cst_81 : f32 to vector<16x16xf32>
    %256 = arith.mulf %255, %252 : vector<16x16xf32>
    %257 = arith.select %254, %252, %256 : vector<16x16xi1>, vector<16x16xf32>
    %258 = arith.addf %257, %20 : vector<16x16xf32>
    %cst_82 = arith.constant dense<0xFF800000> : vector<16xf32>
    %259 = vector.multi_reduction <maximumf>, %258, %cst_82 [1] : vector<16x16xf32> to vector<16xf32>
    %260 = vector.shape_cast %259 : vector<16xf32> to vector<16x1xf32>
    %261 = vector.broadcast %260 : vector<16x1xf32> to vector<16x16xf32>
    %262 = arith.subf %258, %261 : vector<16x16xf32>
    %263 = math.exp %262 : vector<16x16xf32>
    %264 = arith.mulf %263, %15 : vector<16x16xf32>
    %cst_83 = arith.constant dense<0.000000e+00> : vector<16xf32>
    %265 = vector.multi_reduction <add>, %264, %cst_83 [1] : vector<16x16xf32> to vector<16xf32>
    %266 = vector.shape_cast %265 : vector<16xf32> to vector<16x1xf32>
    %cst_84 = arith.constant 1.000000e-16 : f32
    %267 = vector.broadcast %cst_84 : f32 to vector<16x1xf32>
    %268 = arith.addf %266, %267 : vector<16x1xf32>
    %269 = vector.broadcast %268 : vector<16x1xf32> to vector<16x16xf32>
    %270 = arith.divf %264, %269 : vector<16x16xf32>
    %cst_85 = arith.constant dense<0.000000e+00> : vector<16x32xf32>
    %271 = tpu.matmul %270, %244, %cst_85 {dimension_numbers = #tpu.dot_dimension_numbers<[1], [0], [0], [1], [0, 0, 1, 1], [], []>} : vector<16x16xf32>, vector<16x32xf32>, vector<16x32xf32> -> vector<16x32xf32>
    %c184 = arith.constant 184 : index
    %c0_86 = arith.constant 0 : index
    %272 = vector.load %arg3[%c184, %c0_86] : memref<280x128xf32, #tpu.memory_space<vmem>>, vector<1x32xf32>
    %273 = vector.broadcast %272 : vector<1x32xf32> to vector<16x32xf32>
    %274 = arith.addf %271, %273 : vector<16x32xf32>
    %cst_87 = arith.constant dense<0.000000e+00> : vector<16x32xf32>
    %275 = tpu.matmul %270, %5, %cst_87 {dimension_numbers = #tpu.dot_dimension_numbers<[1], [0], [0], [1], [0, 0, 1, 1], [], []>} : vector<16x16xf32>, vector<16x32xf32>, vector<16x32xf32> -> vector<16x32xf32>
    %276 = arith.mulf %275, %10 : vector<16x32xf32>
    %cst_88 = arith.constant dense<0.000000e+00> : vector<32xf32>
    %277 = vector.multi_reduction <add>, %276, %cst_88 [0] : vector<16x32xf32> to vector<32xf32>
    %278 = vector.shape_cast %277 : vector<32xf32> to vector<1x32xf32>
    %c0_89 = arith.constant 0 : index
    %c0_90 = arith.constant 0 : index
    %279 = vector.load %arg5[%c0_89, %c0_90] : memref<1x32xf32, #tpu.memory_space<vmem>>, vector<1x32xf32>
    tpu.vector_store %arg5[%c0_89, %c0_90], %278 {strides = array<i32>} : memref<1x32xf32, #tpu.memory_space<vmem>>, vector<1x32xf32>,
    %c272 = arith.constant 272 : index
    %c0_91 = arith.constant 0 : index
    %280 = vector.load %arg3[%c272, %c0_91] : memref<280x128xf32, #tpu.memory_space<vmem>>, vector<2x16xf32>
    %cst_92 = arith.constant dense<0.000000e+00> : vector<2x32xf32>
    %281 = tpu.matmul %280, %274, %cst_92 {dimension_numbers = #tpu.dot_dimension_numbers<[1], [0], [0], [1], [0, 0, 1, 1], [], []>} : vector<2x16xf32>, vector<16x32xf32>, vector<2x32xf32> -> vector<2x32xf32>
    %c192 = arith.constant 192 : index
    %c0_93 = arith.constant 0 : index
    %282 = vector.load %arg3[%c192, %c0_93] : memref<280x128xf32, #tpu.memory_space<vmem>>, vector<32x16xf32>
    %cst_94 = arith.constant dense<0.000000e+00> : vector<2x16xf32>
    %283 = tpu.matmul %281, %282, %cst_94 {dimension_numbers = #tpu.dot_dimension_numbers<[1], [0], [0], [1], [0, 0, 1, 1], [], []>} : vector<2x32xf32>, vector<32x16xf32>, vector<2x16xf32> -> vector<2x16xf32>
    %c224 = arith.constant 224 : index
    %c0_95 = arith.constant 0 : index
    %284 = vector.load %arg3[%c224, %c0_95] : memref<280x128xf32, #tpu.memory_space<vmem>>, vector<1x16xf32>
    %285 = vector.broadcast %284 : vector<1x16xf32> to vector<2x16xf32>
    %286 = arith.addf %283, %285 : vector<2x16xf32>
    %cst_96 = arith.constant 0.000000e+00 : f32
    %287 = vector.broadcast %cst_96 : f32 to vector<2x16xf32>
    %288 = arith.maximumf %286, %287 : vector<2x16xf32>
    %c232 = arith.constant 232 : index
    %c0_97 = arith.constant 0 : index
    %289 = vector.load %arg3[%c232, %c0_97] : memref<280x128xf32, #tpu.memory_space<vmem>>, vector<16x8xf32>
    %cst_98 = arith.constant dense<0.000000e+00> : vector<2x8xf32>
    %290 = tpu.matmul %288, %289, %cst_98 {dimension_numbers = #tpu.dot_dimension_numbers<[1], [0], [0], [1], [0, 0, 1, 1], [], []>} : vector<2x16xf32>, vector<16x8xf32>, vector<2x8xf32> -> vector<2x8xf32>
    %c248 = arith.constant 248 : index
    %c0_99 = arith.constant 0 : index
    %291 = vector.load %arg3[%c248, %c0_99] : memref<280x128xf32, #tpu.memory_space<vmem>>, vector<1x8xf32>
    %292 = vector.broadcast %291 : vector<1x8xf32> to vector<2x8xf32>
    %293 = arith.addf %290, %292 : vector<2x8xf32>
    %cst_100 = arith.constant 0.000000e+00 : f32
    %294 = vector.broadcast %cst_100 : f32 to vector<2x8xf32>
    %295 = arith.maximumf %293, %294 : vector<2x8xf32>
    %c256 = arith.constant 256 : index
    %c0_101 = arith.constant 0 : index
    %296 = vector.load %arg3[%c256, %c0_101] : memref<280x128xf32, #tpu.memory_space<vmem>>, vector<8x3xf32>
    %cst_102 = arith.constant dense<0.000000e+00> : vector<2x3xf32>
    %297 = tpu.matmul %295, %296, %cst_102 {dimension_numbers = #tpu.dot_dimension_numbers<[1], [0], [0], [1], [0, 0, 1, 1], [], []>} : vector<2x8xf32>, vector<8x3xf32>, vector<2x3xf32> -> vector<2x3xf32>
    %c264 = arith.constant 264 : index
    %c0_103 = arith.constant 0 : index
    %298 = vector.load %arg3[%c264, %c0_103] : memref<280x128xf32, #tpu.memory_space<vmem>>, vector<1x3xf32>
    %299 = vector.broadcast %298 : vector<1x3xf32> to vector<2x3xf32>
    %300 = arith.addf %297, %299 : vector<2x3xf32>
    %c0_104 = arith.constant 0 : index
    %c0_105 = arith.constant 0 : index
    %301 = vector.load %arg4[%c0_104, %c0_105] : memref<2x3xf32, #tpu.memory_space<vmem>>, vector<2x3xf32>
    tpu.vector_store %arg4[%c0_104, %c0_105], %300 {strides = array<i32>} : memref<2x3xf32, #tpu.memory_space<vmem>>, vector<2x3xf32>,
    return
  }
}

</mosaic_0001>

<bundles_post_ra>
// kernel: tpu_custom_call.1
= control target key start
LH: loop header
LB: loop body
LE: loop exit
PB: predicated region body
PF: predicated region fallthrough
CT: control target
= control target key end

     0   :  { %11 = vsyncpa [#allocation4], 0  ;;  %s2584_s0 = inlined_call_operand.hbm [shape: s32[1,32], index: 0, kind: input, shape index: {}]   ;;  %s2585_s1 = inlined_call_operand.hbm [shape: s32[1,32], index: 1, kind: input, shape index: {}]   ;;  %s2586_s2 = inlined_call_operand.hbm [shape: f32[16,16], index: 2, kind: input, shape index: {}]   ;;  %s2587_s3 = inlined_call_operand.hbm [shape: f32[280,128], index: 3, kind: input, shape index: {}]   ;;  %s2588_s4 = inlined_call_operand.hbm [shape: f32[2,3], index: 4, kind: output, shape index: {0}]   ;;  %s2589_s5 = inlined_call_operand.hbm [shape: f32[1,32], index: 5, kind: output, shape index: {1}]  }
   0x1   :  { %12 = vsyncpa [#allocation7], 0 }
   0x2   :  { %13 = vsyncpa [#allocation10], 0 }
   0x3   :  { %14 = vsyncpa [#allocation5], 0  ;;  %s32_s20 = sshll.u32 %s2585_s1, 4  ;;  %s33_s20 = int_to_ptr.hbm [resolvable:$true] %s32_s20 }
   0x4   :  { %15 = vsyncpa [#allocation13], 0  ;;  %s1929_s21 = smov [#allocation6]   ;;  %s21_s25 = sshll.u32 %s2584_s0, 4  ;;  %s22_s25 = int_to_ptr.hbm [resolvable:$true] %s21_s25 }
   0x5   :  { %s34_s22 = sshll.u32 %s1929_s21, 4  ;;  %s1930_s26 = smov [#allocation3]   ;;  %s35_s22 = int_to_ptr.vmem [resolvable:$true] %s34_s22 }
   0x6   :  { %37 = dma.hbm_to_vmem [thread:$0]  %s33_s20, 16, %s35_s22, [#allocation7]  }
   0x7   :  { %s23_s27 = sshll.u32 %s1930_s26, 4  ;;  %s42_s30 = sshll.u32 %s2586_s2, 4  ;;  %s24_s27 = int_to_ptr.vmem [resolvable:$true] %s23_s27  ;;  %s43_s30 = int_to_ptr.hbm [resolvable:$true] %s42_s30 }
   0x8   :  { %26 = dma.hbm_to_vmem [thread:$0]  %s22_s25, 16, %s24_s27, [#allocation4]  }
   0x9   :  { %s1931_s1 = smov [#allocation8]   ;;  %s55_s9 = sshll.u32 %s2587_s3, 4  ;;  %s56_s9 = int_to_ptr.hbm [resolvable:$true] %s55_s9 }
   0xa   :  { %s44_s6 = sshll.u32 %s1931_s1, 4  ;;  %s1932_s10 = smov 128   ;;  %s45_s6 = int_to_ptr.vmem [resolvable:$true] %s44_s6 }
   0xb   :  { %s1933_s0 = smov 8   ;;  %s1934_s11 = smov [#allocation9]  }
   0xc   :  { %50 = dma.hbm_to_vmem [thread:$0]  %s43_s30, 256, %s45_s6, [#allocation7], %s1932_s10, %s1932_s10, %s1933_s0  }
   0xd   :  { %s57_s12 = sshll.u32 %s1934_s11, 4  ;;  %s58_s12 = int_to_ptr.vmem [resolvable:$true] %s57_s12 }
   0xe   :  { %63 = dma.hbm_to_vmem [thread:$0]  %s56_s9, 4480, %s58_s12, [#allocation10], %s1932_s10, %s1932_s10, %s1933_s0  }
   0xf   :  { %1919 = dma.done.wait [#allocation4], 16  }
  0x10   :  { %1920 = vsyncadd [#allocation4], 4294967280 }
  0x11   :  { %1921 = dma.done.wait [#allocation7], 272  }
  0x12   :  { %1922 = vsyncadd [#allocation7], 4294967024 }
  0x13   :  { %1923 = dma.done.wait [#allocation10], 4480  }
  0x14   :  { %1924 = vsyncadd [#allocation10], 4294962816  ;;  %v146_v0 = vld [vmem:[#allocation9 + $0x8] sm:$0xff]  ;;  %v145_v1 = vld [vmem:[#allocation9] sm:$0xff]  ;;  %vm147_vm0 = vcmask 130048   ;;  %v1935_v12 = vmov 10   ;;  %v80_v23 = vlaneseq }
  0x15   :  { %168 = vmatpush.msra.mxu1 %v146_v0  ;;  %v143_v2 = vld [vmem:[#allocation8] sm:$0xff]  ;;  %v184_v3 = vld [vmem:[#allocation9 + $0x48] sm:$0xff]  ;;  %v183_v4 = vld [vmem:[#allocation9 + $0x40] sm:$0xff]  ;;  %1644 = vset.pattern.permute.xlu1 %v1935_v12  ;;  %v1936_v13 = vmov 9   ;;  %v1937_v14 = vmov 8   ;;  %vm185_vm1 = vcmask 523264  }
  0x16   :  { %200 = vmatpush.msra.mxu2 %v184_v3  ;;  %v182_v5 = vld [vmem:[#allocation9 + $0x38] sm:$0xff]  ;;  %v181_v6 = vld [vmem:[#allocation9 + $0x30] sm:$0xff]  ;;  %v180_v7 = vld [vmem:[#allocation9 + $0x28] sm:$0xff]  ;;  %1645 = vset.pattern.permute.xlu2 %v1936_v13  ;;  %v1938_v19 = vmov 11   ;;  %v1939_v20 = vmov 12   ;;  %v1940_v21 = vmov 14  }
  0x17   :  { %169 = vmatpush.msra.mxu1 %v145_v1  ;;  %v144_v8 = vld [vmem:[#allocation8 + $0x8] sm:$0xff]  ;;  %v179_v9 = vld [vmem:[#allocation9 + $0x20] sm:$0xff]  ;;  %v177_v11 = vld [vmem:[#allocation9 + $0x10] sm:$0xff]  ;;  %1643 = vset.pattern.permute.xlu0 %v1937_v14  ;;  %v1941_v22 = vmov 13   ;;  %v2010_v24 = vshrl.u32 %v80_v23, 7  ;;  %v1942_v27 = vmov 15  }
  0x18   :  { %1576 = vmatmul.msk.f32.vlgmr.msra.gmra.mxu1 %vm147_vm0, %v143_v2  ;;  %201 = vmatpush.msra.mxu2 %v183_v4  ;;  %v178_v10 = vld [vmem:[#allocation9 + $0x18] sm:$0xff]  ;;  %v2012_v25 = vld [vmem:[#allocation3] ss:$0 sm:$0xff]  ;;  %vm99_vm2 = vcmask 261120   ;;  %v1697_v28 = vld [vmem:[#allocation6] ss:$0 sm:$0xff] }
  0x19   :  { %v2015_v26 = vadd.s32 8, %v2010_v24  ;;  %vm85_vm4 = vcmp.eq.s32.totalorder %v2012_v25, %v2010_v24  ;;  %v1943_v29 = vmov 0.0   ;;  %vm93_vm5 = vcmp.eq.s32.totalorder %v1697_v28, %v2010_v24  ;;  %s1944_s2 = smov 112   ;;  %s1945_s3 = smov 120  }
  0x1a   :  { %202 = vmatpush.msra.mxu2 %v182_v5  ;;  %v1566_v31 = vsel %vm85_vm4, 1.0, %v1943_v29  ;;  %v2033_v32 = vsel %vm93_vm5, 1.0, %v1943_v29  ;;  %v1946_v1 = vmov -1e+30   ;;  %s1947_s13 = smov 80   ;;  %s1948_s14 = smov 104  }
  0x1b   :  { %vm86_vm3 = vcmp.eq.s32.totalorder %v2012_v25, %v2015_v26  ;;  %vm94_vm6 = vcmp.eq.s32.totalorder %v1697_v28, %v2015_v26  ;;  %s1949_s15 = smov 88   ;;  %s1950_s16 = smov 96  }
  0x1c   :  { %203 = vmatpush.msra.mxu2 %v181_v6  ;;  %v1567_v30 = vsel %vm86_vm3, 1.0, %v1943_v29  ;;  %v2039_v33 = vsel %vm94_vm6, 1.0, %v1943_v29  ;;  %s1951_s17 = smov 72   ;;  %s1952_s18 = smov 24  }
  0x1d   :  { %1570 = vmatpush.xpose.msk.msra.mxu0 %vm99_vm2, %v1567_v30  ;;  %s1953_s19 = smov 48   ;;  %s1954_s20 = smov 40  }
  0x1e   :  { %204 = vmatpush.msra.mxu2 %v180_v7  ;;  %s1955_s21 = smov 32   ;;  %s1956_s22 = smov 56  }
  0x1f   :  { %s1957_s23 = smov 16   ;;  %s1960_s24 = smov [#allocation12]  }
  0x20   :  { %1577 = vmatmul.msk.f32.gmra.mxu1 %vm147_vm0, %v144_v8  ;;  %205 = vmatpush.msra.mxu2 %v179_v9  ;;  %s1547_s25 = sshll.u32 %s1960_s24, 4  ;;  %s1549_s28 = sshll.u32 %s2589_s5, 4  ;;  %s1548_s25 = int_to_ptr.vmem [resolvable:$true] %s1547_s25  ;;  %s1550_s28 = int_to_ptr.hbm [resolvable:$true] %s1549_s28 }
  0x21   :  { %1571 = vmatpush.xpose.msk.msra.mxu0 %vm99_vm2, %v1566_v31  ;;  %s1961_s29 = smov [#allocation11]   ;;  %s1538_s7 = sshll.u32 %s2588_s4, 4  ;;  %s1539_s7 = int_to_ptr.hbm [resolvable:$true] %s1538_s7 }
  0x22   :  { %206 = vmatpush.msra.mxu2 %v178_v10  ;;  %s1536_s30 = sshll.u32 %s1961_s29, 4  ;;  %s1537_s30 = int_to_ptr.vmem [resolvable:$true] %s1536_s30 }
  0x24   :  { %207 = vmatpush.msra.mxu2 %v177_v11  ;;  %1572 = vmatmul.msk.f32.vlgmr.msra.gmra.mxu0 %vm99_vm2, %v2033_v32 }
  0x2c   :  { %1573 = vmatmul.msk.f32.gmra.mxu0 %vm99_vm2, %v2039_v33 }
  0x95   :  { %v171_v15 = vpop.f32.mrf.mxu1 }
  0x96   :  { %1578 = vmatmul.msk.f32.vlgmr.msra.gmra.mxu2 %vm185_vm1, %v171_v15 }
  0x9d   :  { %v174_v16 = vpop.f32.mrf.mxu1 }
  0x9e   :  { %340 = vmatpush.msra.mxu3 %v174_v16  ;;  %1579 = vmatmul.msk.f32.gmra.mxu2 %vm185_vm1, %v174_v16  ;;  %v2043_v34 = vpack.i.bf16 %v171_v15, %v174_v16 }
  0xa0   :  { %341 = vmatpush.msra.mxu3 %v171_v15 }
  0xa1   :  { %v2061_v50 = vpop.f32.mrf.mxu0 }
  0xa2   :  { %vm135_vm7 = vcmp.gt.f32.partialorder %v2061_v50, 0.0 }
  0xa3   :  { %v2082_v2 = vsel %vm135_vm7, 0.0, %v1946_v1 }
  0xa9   :  { %v2065_v53 = vpop.f32.mrf.mxu0 }
  0xaa   :  { %vm136_vm8 = vcmp.gt.f32.partialorder %v2065_v53, 0.0 }
  0xab   :  { %v2086_v3 = vsel %vm136_vm8, 0.0, %v1946_v1 }
 0x119   :  { %v209_v17 = vpop.f32.mrf.mxu2 }
 0x11a   :  { %353 = vperm.xlu2 %1645, %v209_v17   ;;  %470 = vperm.xlu1 %1644, %v209_v17  }
 0x11b   :  { %249 = vperm.xlu0 %1643, %v209_v17  }
 0x121   :  { %v212_v18 = vpop.f32.mrf.mxu2 }
 0x122   :  { %1646 = vset.pattern.permute.xlu2 %v1938_v19 }
 0x123   :  { %587 = vperm.xlu2 %1646, %v209_v17   ;;  %254 = vperm.xlu0 %1643, %v212_v18  }
 0x12b   :  { %1647 = vset.pattern.permute.xlu2 %v1939_v20  ;;  %1651 = vset.pattern.permute.xlu0 %v1935_v12 }
 0x12c   :  { %704 = vperm.xlu2 %1647, %v209_v17   ;;  %474 = vperm.xlu0 %1651, %v212_v18  }
 0x134   :  { %1648 = vset.pattern.permute.xlu2 %v1940_v21  ;;  %1653 = vset.pattern.permute.xlu0 %v1938_v19 }
 0x135   :  { %938 = vperm.xlu2 %1648, %v209_v17   ;;  %591 = vperm.xlu0 %1653, %v212_v18  }
 0x13d   :  { %1649 = vset.pattern.permute.xlu2 %v1941_v22  ;;  %1654 = vset.pattern.permute.xlu0 %v1939_v20 }
 0x13e   :  { %821 = vperm.xlu2 %1649, %v209_v17   ;;  %708 = vperm.xlu0 %1654, %v212_v18  }
 0x146   :  { %1650 = vset.pattern.permute.xlu2 %v1942_v27  ;;  %1656 = vset.pattern.permute.xlu0 %v1941_v22 }
 0x147   :  { %1055 = vperm.xlu2 %1650, %v209_v17   ;;  %825 = vperm.xlu0 %1656, %v212_v18  }
 0x14f   :  { %1652 = vset.pattern.permute.xlu2 %v1936_v13  ;;  %215 = vxpose.xlu1.b32.start [1/2] (short) (narrow) %v209_v17, 8 }
 0x150   :  { %357 = vperm.xlu2 %1652, %v212_v18  }
 0x157   :  { %216 = vxpose.xlu1.b32.end [2/2] (short) (narrow) %v212_v18, 8 }
 0x158   :  { %1655 = vset.pattern.permute.xlu2 %v1940_v21 }
 0x159   :  { %942 = vperm.xlu2 %1655, %v212_v18  }
 0x161   :  { %1659 = vrot.lane.b32.xlu2 %v2043_v34, %s1944_s2 }
 0x174   :  { %v354_v35 = vpop.permute.xlu2 %353 }
 0x17d   :  { %v2046_v36 = vpop.permute.xlu2 %587 }
 0x186   :  { %v705_v37 = vpop.permute.xlu2 %704 }
 0x18c   :  { %v471_v51 = vpop.permute.xlu1 %470 }
 0x18d   :  { %v250_v46 = vpop.permute.xlu0 %249 }
 0x18f   :  { %v939_v38 = vpop.permute.xlu2 %938 }
 0x195   :  { %v255_v47 = vpop.permute.xlu0 %254 }
 0x198   :  { %v2048_v39 = vpop.permute.xlu2 %821 }
 0x19e   :  { %v2057_v48 = vpop.permute.xlu0 %474 }
 0x1a1   :  { %v2050_v40 = vpop.permute.xlu2 %1055 }
 0x1a7   :  { %v2059_v49 = vpop.permute.xlu0 %591 }
 0x1aa   :  { %v2052_v41 = vpop.permute.xlu2 %357  ;;  %1657 = vset.pattern.permute.xlu1 %v1942_v27 }
 0x1b0   :  { %v2063_v52 = vpop.permute.xlu0 %708 }
 0x1b1   :  { %1059 = vperm.xlu1 %1657, %v212_v18  }
 0x1b3   :  { %v2054_v42 = vpop.permute.xlu2 %942 }
 0x1b9   :  { %1664 = vrot.lane.b32.xlu1 %v2043_v34, %s1945_s3  ;;  %v826_v59 = vpop.permute.xlu0 %825 }
 0x1bb   :  { %v1660_v43 = vpop.permute.xlu2 %1659 }
 0x1bc   :  { %v1661_v44 = vunpack.i.l.bf16 %v1660_v43  ;;  %v1662_v45 = vunpack.i.h.bf16 %v1660_v43 }
 0x1be   :  { %566 = vmatpush.msrb.mxu3 %v1661_v44 }
 0x1c0   :  { %567 = vmatpush.msrb.mxu3 %v1662_v45 }
 0x1f3   :  { %v2068_v54 = vpop.trf.xlu1 }
 0x1f4   :  { %v711_v55 = vperm.slane %v2068_v54, 4  ;;  %v257_v56 = vperm.slane %v2068_v54, 0  ;;  %v828_v57 = vperm.slane %v2068_v54, 5  ;;  %v945_v58 = vperm.slane %v2068_v54, 6 }
 0x1f5   :  { %v477_v60 = vperm.slane %v2068_v54, 2  ;;  %v360_v8 = vperm.slane %v2068_v54, 1  ;;  %v594_v30 = vperm.slane %v2068_v54, 3 }
 0x1f6   :  { %v712_v61 = vadd.f32 %v711_v55, %v705_v37  ;;  %v258_v62 = vadd.f32 %v257_v56, %v250_v46  ;;  %v830_v63 = vadd.f32 %v828_v57, %v826_v59  ;;  %v946_v0 = vadd.f32 %v945_v58, %v939_v38 }
 0x1f7   :  { %v478_v4 = vadd.f32 %v477_v60, %v471_v51  ;;  %v361_v19 = vadd.f32 %v360_v8, %v354_v35  ;;  %v259_v23 = vadd.f32 %v257_v56, %v255_v47  ;;  %v595_v43 = vadd.f32 %v594_v30, %v2046_v36 }
 0x1f8   :  { %vm714_vm9 = vcmp.gt.f32.partialorder %v712_v61, 0.0  ;;  %v716_v5 = vmul.f32 0.2, %v712_v61  ;;  %vm260_vm10 = vcmp.gt.f32.partialorder %v258_v62, 0.0  ;;  %v262_v6 = vmul.f32 0.2, %v258_v62 }
 0x1f9   :  { %vm832_vm11 = vcmp.gt.f32.partialorder %v830_v63, 0.0  ;;  %v834_v7 = vmul.f32 0.2, %v830_v63  ;;  %vm948_vm12 = vcmp.gt.f32.partialorder %v946_v0, 0.0  ;;  %v950_v11 = vmul.f32 0.2, %v946_v0 }
 0x1fa   :  { %v718_v9 = vsel %vm714_vm9, %v712_v61, %v716_v5  ;;  %v264_v10 = vsel %vm260_vm10, %v258_v62, %v262_v6  ;;  %v482_v12 = vmul.f32 0.2, %v478_v4  ;;  %vm480_vm13 = vcmp.gt.f32.partialorder %v478_v4, 0.0 }
 0x1fb   :  { %v2090_v13 = vadd.f32 %v718_v9, %v2082_v2  ;;  %v2093_v14 = vadd.f32 %v264_v10, %v2082_v2  ;;  %v836_v15 = vsel %vm832_vm11, %v830_v63, %v834_v7  ;;  %v952_v21 = vsel %vm948_vm12, %v946_v0, %v950_v11 }
 0x1fc   :  { %v2096_v16 = vadd.f32 %v836_v15, %v2086_v3  ;;  %v484_v22 = vsel %vm480_vm13, %v478_v4, %v482_v12  ;;  %v2108_v27 = vadd.f32 %v952_v21, %v2082_v2  ;;  %v365_v31 = vmul.f32 0.2, %v361_v19 }
 0x1fd   :  { %v722_v17 = vsel %vm147_vm0, %v2090_v13, -inf  ;;  %v268_v18 = vsel %vm147_vm0, %v2093_v14, -inf  ;;  %v2111_v28 = vadd.f32 %v484_v22, %v2082_v2  ;;  %v263_v35 = vmul.f32 0.2, %v259_v23 }
 0x1fe   :  { %723 = vmax.xlane.f32.xlu0 %v722_v17  ;;  %269 = vmax.xlane.f32.xlu2 %v268_v18  ;;  %v842_v20 = vsel %vm147_vm0, %v2096_v16, -inf  ;;  %vm363_vm14 = vcmp.gt.f32.partialorder %v361_v19, 0.0  ;;  %vm261_vm15 = vcmp.gt.f32.partialorder %v259_v23, 0.0  ;;  %v956_v37 = vsel %vm147_vm0, %v2108_v27, -inf }
 0x1ff   :  { %843 = vmax.xlane.f32.xlu1 %v842_v20  ;;  %v488_v38 = vsel %vm147_vm0, %v2111_v28, -inf  ;;  %v367_v44 = vsel %vm363_vm14, %v361_v19, %v365_v31  ;;  %v265_v45 = vsel %vm261_vm15, %v259_v23, %v263_v35  ;;  %v479_v46 = vadd.f32 %v477_v60, %v2057_v48 }
 0x200   :  { %v2123_v47 = vadd.f32 %v367_v44, %v2082_v2  ;;  %v2126_v51 = vadd.f32 %v265_v45, %v2086_v3  ;;  %v599_v56 = vmul.f32 0.2, %v595_v43  ;;  %vm597_vm5 = vcmp.gt.f32.partialorder %v595_v43, 0.0 }
 0x201   :  { %v483_v59 = vmul.f32 0.2, %v479_v46  ;;  %vm481_vm6 = vcmp.gt.f32.partialorder %v479_v46, 0.0  ;;  %v829_v62 = vadd.f32 %v828_v57, %v2048_v39  ;;  %v713_v63 = vadd.f32 %v711_v55, %v2063_v52 }
 0x202   :  { %v371_v61 = vsel %vm147_vm0, %v2123_v47, -inf  ;;  %v271_v36 = vsel %vm147_vm0, %v2126_v51, -inf  ;;  %v601_v48 = vsel %vm597_vm5, %v595_v43, %v599_v56  ;;  %v1062_v4 = vperm.slane %v2068_v54, 7 }
 0x203   :  { %v485_v60 = vsel %vm481_vm6, %v479_v46, %v483_v59  ;;  %v2137_v0 = vadd.f32 %v601_v48, %v2082_v2  ;;  %v833_v5 = vmul.f32 0.2, %v829_v62  ;;  %v717_v6 = vmul.f32 0.2, %v713_v63 }
 0x204   :  { %v2140_v1 = vadd.f32 %v485_v60, %v2086_v3  ;;  %vm831_vm9 = vcmp.gt.f32.partialorder %v829_v62, 0.0  ;;  %vm715_vm10 = vcmp.gt.f32.partialorder %v713_v63, 0.0  ;;  %v1063_v52 = vadd.f32 %v1062_v4, %v2050_v40 }
 0x205   :  { %v605_v39 = vsel %vm147_vm0, %v2137_v0, -inf  ;;  %v835_v55 = vsel %vm831_vm9, %v829_v62, %v833_v5  ;;  %v719_v7 = vsel %vm715_vm10, %v713_v63, %v717_v6  ;;  %v947_v9 = vadd.f32 %v945_v58, %v2054_v42 }
 0x206   :  { %957 = vmax.xlane.f32.xlu0 %v956_v37  ;;  %489 = vmax.xlane.f32.xlu2 %v488_v38  ;;  %v491_v57 = vsel %vm147_vm0, %v2140_v1, -inf  ;;  %v2152_v10 = vadd.f32 %v835_v55, %v2082_v2  ;;  %v2155_v11 = vadd.f32 %v719_v7, %v2086_v3  ;;  %v1067_v12 = vmul.f32 0.2, %v1063_v52 }
 0x207   :  { %v951_v15 = vmul.f32 0.2, %v947_v9  ;;  %vm1065_vm11 = vcmp.gt.f32.partialorder %v1063_v52, 0.0  ;;  %vm949_vm12 = vcmp.gt.f32.partialorder %v947_v9, 0.0  ;;  %v362_v58 = vadd.f32 %v360_v8, %v2052_v41 }
 0x208   :  { %v839_v40 = vsel %vm147_vm0, %v2152_v10, -inf  ;;  %v725_v17 = vsel %vm147_vm0, %v2155_v11, -inf  ;;  %v1069_v18 = vsel %vm1065_vm11, %v1063_v52, %v1067_v12  ;;  %v596_v41 = vadd.f32 %v594_v30, %v2059_v49 }
 0x209   :  { %v953_v42 = vsel %vm949_vm12, %v947_v9, %v951_v15  ;;  %v2165_v19 = vadd.f32 %v1069_v18, %v2082_v2  ;;  %v366_v21 = vmul.f32 0.2, %v362_v58  ;;  %vm364_vm13 = vcmp.gt.f32.partialorder %v362_v58, 0.0 }
 0x20a   :  { %v2168_v20 = vadd.f32 %v953_v42, %v2086_v3  ;;  %v600_v37 = vmul.f32 0.2, %v596_v41  ;;  %vm598_vm14 = vcmp.gt.f32.partialorder %v596_v41, 0.0  ;;  %v2198_v7 = vsel %vm135_vm7, 1.0, %v1943_v29 }
 0x20b   :  { %v1073_v23 = vsel %vm147_vm0, %v2165_v19, -inf  ;;  %v368_v35 = vsel %vm364_vm13, %v362_v58, %v366_v21 }
 0x20c   :  { %v959_v31 = vsel %vm147_vm0, %v2168_v20, -inf  ;;  %v2178_v8 = vadd.f32 %v368_v35, %v2086_v3  ;;  %v602_v56 = vsel %vm598_vm14, %v596_v41, %v600_v37 }
 0x20d   :  { %v2183_v59 = vadd.f32 %v602_v56, %v2086_v3 }
 0x20e   :  { %372 = vmax.xlane.f32.xlu2 %v371_v61  ;;  %272 = vmax.xlane.f32.xlu0 %v271_v36  ;;  %v374_v44 = vsel %vm147_vm0, %v2178_v8, -inf }
 0x20f   :  { %v608_v54 = vsel %vm147_vm0, %v2183_v59, -inf }
 0x216   :  { %606 = vmax.xlane.f32.xlu2 %v605_v39  ;;  %492 = vmax.xlane.f32.xlu0 %v491_v57 }
 0x21e   :  { %840 = vmax.xlane.f32.xlu2 %v839_v40  ;;  %726 = vmax.xlane.f32.xlu0 %v725_v17 }
 0x223   :  { %v1060_v22 = vpop.permute.xlu1 %1059 }
 0x224   :  { %v1064_v45 = vadd.f32 %v1062_v4, %v1060_v22 }
 0x226   :  { %1074 = vmax.xlane.f32.xlu2 %v1073_v23  ;;  %960 = vmax.xlane.f32.xlu0 %v959_v31  ;;  %v1068_v49 = vmul.f32 0.2, %v1064_v45  ;;  %vm1066_vm15 = vcmp.gt.f32.partialorder %v1064_v45, 0.0 }
 0x228   :  { %v1070_v30 = vsel %vm1066_vm15, %v1064_v45, %v1068_v49 }
 0x229   :  { %v2188_v61 = vadd.f32 %v1070_v30, %v2086_v3 }
 0x22b   :  { %v1665_v38 = vpop.permute.xlu1 %1664  ;;  %v1076_v36 = vsel %vm147_vm0, %v2188_v61, -inf }
 0x22c   :  { %v1666_v43 = vunpack.i.l.bf16 %v1665_v38  ;;  %v1667_v46 = vunpack.i.h.bf16 %v1665_v38 }
 0x22e   :  { %449 = vmatpush.msrb.mxu1 %v1666_v43  ;;  %375 = vmax.xlane.f32.xlu2 %v374_v44 }
 0x230   :  { %450 = vmatpush.msrb.mxu1 %v1667_v46 }
 0x236   :  { %609 = vmax.xlane.f32.xlu2 %v608_v54 }
 0x23e   :  { %1077 = vmax.xlane.f32.xlu2 %v1076_v36 }
 0x271   :  { %v724_v62 = vpop.xlane.xlu0 %723  ;;  %v270_v48 = vpop.xlane.xlu2 %269 }
 0x272   :  { %v274_v60 = vsub.f32 %v2093_v14, %v270_v48 }
 0x274   :  { %v276_v63 = vmul.f32 1.442695, %v274_v60 }
 0x276   :  { %1703 = vpow2.f32 %v276_v63  ;;  %v2240_v63 = vsel %vm136_vm8, 1.0, %v1943_v29 }
 0x279   :  { %v958_v4 = vpop.xlane.xlu0 %957  ;;  %v490_v5 = vpop.xlane.xlu2 %489 }
 0x27a   :  { %v962_v6 = vsub.f32 %v2108_v27, %v958_v4  ;;  %v494_v39 = vsub.f32 %v2111_v28, %v490_v5  ;;  %v728_v28 = vsub.f32 %v2090_v13, %v724_v62 }
 0x27c   :  { %v964_v57 = vmul.f32 1.442695, %v962_v6  ;;  %v496_v52 = vmul.f32 1.442695, %v494_v39  ;;  %v1704_v55 = vpop.eup %1703  ;;  %v730_v42 = vmul.f32 1.442695, %v728_v28 }
 0x27d   :  { %v2201_v9 = vmul.f32 %v1704_v55, %v2198_v7 }
 0x27e   :  { %1705 = vpow2.f32 %v964_v57 }
 0x27f   :  { %1707 = vpow2.f32 %v496_v52  ;;  %v282_v14 = vsel %vm147_vm0, %v2201_v9, 0.0 }
 0x280   :  { %283 = vadd.xlane.f32.xlu0 %v282_v14 }
 0x281   :  { %v373_v27 = vpop.xlane.xlu2 %372  ;;  %v273_v12 = vpop.xlane.xlu0 %272 }
 0x282   :  { %v377_v15 = vsub.f32 %v2123_v47, %v373_v27  ;;  %v275_v23 = vsub.f32 %v2126_v51, %v273_v12 }
 0x284   :  { %v1706_v40 = vpop.eup %1705  ;;  %v379_v17 = vmul.f32 1.442695, %v377_v15  ;;  %v278_v38 = vmul.f32 1.442695, %v275_v23 }
 0x285   :  { %v1708_v50 = vpop.eup %1707  ;;  %v2208_v18 = vmul.f32 %v1706_v40, %v2198_v7 }
 0x286   :  { %1709 = vpow2.f32 %v379_v17  ;;  %v2211_v58 = vmul.f32 %v1708_v50, %v2198_v7 }
 0x287   :  { %v970_v21 = vsel %vm147_vm0, %v2208_v18, 0.0  ;;  %1711 = vpow2.f32 %v730_v42 }
 0x288   :  { %971 = vadd.xlane.f32.xlu1 %v970_v21  ;;  %v502_v13 = vsel %vm147_vm0, %v2211_v58, 0.0 }
 0x289   :  { %503 = vadd.xlane.f32.xlu0 %v502_v13  ;;  %v607_v47 = vpop.xlane.xlu2 %606  ;;  %v493_v22 = vpop.xlane.xlu0 %492 }
 0x28a   :  { %v611_v31 = vsub.f32 %v2137_v0, %v607_v47  ;;  %v495_v56 = vsub.f32 %v2140_v1, %v493_v22 }
 0x28c   :  { %v1710_v35 = vpop.eup %1709  ;;  %v613_v41 = vmul.f32 1.442695, %v611_v31  ;;  %v498_v48 = vmul.f32 1.442695, %v495_v56 }
 0x28d   :  { %v2220_v37 = vmul.f32 %v1710_v35, %v2198_v7  ;;  %v1712_v44 = vpop.eup %1711 }
 0x28e   :  { %1713 = vpow2.f32 %v613_v41  ;;  %v2228_v49 = vmul.f32 %v1712_v44, %v2198_v7  ;;  %v844_v41 = vpop.xlane.xlu1 %843 }
 0x28f   :  { %v385_v43 = vsel %vm147_vm0, %v2220_v37, 0.0  ;;  %1715 = vpow2.f32 %v278_v38 }
 0x290   :  { %386 = vadd.xlane.f32.xlu2 %v385_v43  ;;  %v736_v60 = vsel %vm147_vm0, %v2228_v49, 0.0  ;;  %v846_v43 = vsub.f32 %v2096_v16, %v844_v41 }
 0x291   :  { %v841_v45 = vpop.xlane.xlu2 %840  ;;  %v727_v46 = vpop.xlane.xlu0 %726 }
 0x292   :  { %v845_v51 = vsub.f32 %v2152_v10, %v841_v45  ;;  %v729_v0 = vsub.f32 %v2155_v11, %v727_v46 }
 0x294   :  { %v1714_v54 = vpop.eup %1713  ;;  %v847_v30 = vmul.f32 1.442695, %v845_v51  ;;  %v732_v36 = vmul.f32 1.442695, %v729_v0 }
 0x295   :  { %v2231_v62 = vmul.f32 %v1714_v54, %v2198_v7  ;;  %v1716_v10 = vpop.eup %1715 }
 0x296   :  { %1717 = vpow2.f32 %v847_v30  ;;  %v2244_v5 = vmul.f32 %v1716_v10, %v2240_v63 }
 0x297   :  { %1719 = vpow2.f32 %v732_v36  ;;  %v619_v1 = vsel %vm147_vm0, %v2231_v62, 0.0 }
 0x298   :  { %737 = vadd.xlane.f32.xlu2 %v736_v60  ;;  %620 = vadd.xlane.f32.xlu0 %v619_v1  ;;  %1721 = vpow2.f32 %v498_v48  ;;  %v285_v53 = vsel %vm147_vm0, %v2244_v5, 0.0 }
 0x299   :  { %v1075_v11 = vpop.xlane.xlu2 %1074  ;;  %v961_v50 = vpop.xlane.xlu0 %960 }
 0x29a   :  { %v1079_v4 = vsub.f32 %v2165_v19, %v1075_v11 }
 0x29c   :  { %v1718_v6 = vpop.eup %1717  ;;  %v1081_v39 = vmul.f32 1.442695, %v1079_v4 }
 0x29d   :  { %v1720_v57 = vpop.eup %1719  ;;  %v2247_v52 = vmul.f32 %v1718_v6, %v2198_v7 }
 0x29e   :  { %1723 = vpow2.f32 %v1081_v39  ;;  %v2250_v55 = vmul.f32 %v1720_v57, %v2240_v63  ;;  %v1722_v19 = vpop.eup %1721 }
 0x29f   :  { %v853_v29 = vsel %vm147_vm0, %v2247_v52, 0.0  ;;  %v2260_v28 = vmul.f32 %v1722_v19, %v2240_v63 }
 0x2a0   :  { %854 = vadd.xlane.f32.xlu0 %v853_v29  ;;  %v739_v14 = vsel %vm147_vm0, %v2250_v55, 0.0  ;;  %286 = vadd.xlane.f32.xlu2 %v285_v53 }
 0x2a1   :  { %740 = vadd.xlane.f32.xlu1 %v739_v14  ;;  %v376_v27 = vpop.xlane.xlu2 %375  ;;  %v505_v21 = vsel %vm147_vm0, %v2260_v28, 0.0 }
 0x2a2   :  { %v378_v12 = vsub.f32 %v2178_v8, %v376_v27  ;;  %v963_v8 = vsub.f32 %v2168_v20, %v961_v50 }
 0x2a4   :  { %v1724_v15 = vpop.eup %1723  ;;  %v381_v40 = vmul.f32 1.442695, %v378_v12  ;;  %v966_v35 = vmul.f32 1.442695, %v963_v8 }
 0x2a5   :  { %v2263_v17 = vmul.f32 %v1724_v15, %v2198_v7 }
 0x2a6   :  { %1725 = vpow2.f32 %v381_v40 }
 0x2a7   :  { %v1087_v42 = vsel %vm147_vm0, %v2263_v17, 0.0 }
 0x2a8   :  { %1088 = vadd.xlane.f32.xlu0 %v1087_v42  ;;  %506 = vadd.xlane.f32.xlu2 %v505_v21 }
 0x2a9   :  { %v610_v13 = vpop.xlane.xlu2 %609 }
 0x2aa   :  { %v612_v47 = vsub.f32 %v2183_v59, %v610_v13  ;;  %v849_v59 = vmul.f32 1.442695, %v846_v43 }
 0x2ac   :  { %v1726_v22 = vpop.eup %1725  ;;  %v615_v23 = vmul.f32 1.442695, %v612_v47 }
 0x2ad   :  { %v2272_v31 = vmul.f32 %v1726_v22, %v2240_v63 }
 0x2ae   :  { %1727 = vpow2.f32 %v615_v23 }
 0x2af   :  { %v388_v38 = vsel %vm147_vm0, %v2272_v31, 0.0  ;;  %1729 = vpow2.f32 %v966_v35 }
 0x2b0   :  { %389 = vadd.xlane.f32.xlu0 %v388_v38  ;;  %1731 = vpow2.f32 %v849_v59 }
 0x2b1   :  { %v1078_v30 = vpop.xlane.xlu2 %1077 }
 0x2b2   :  { %v1080_v36 = vsub.f32 %v2188_v61, %v1078_v30 }
 0x2b4   :  { %v1728_v44 = vpop.eup %1727  ;;  %v1083_v48 = vmul.f32 1.442695, %v1080_v36 }
 0x2b5   :  { %v2278_v20 = vmul.f32 %v1728_v44, %v2240_v63  ;;  %v1730_v46 = vpop.eup %1729 }
 0x2b6   :  { %v2284_v56 = vmul.f32 %v1730_v46, %v2240_v63  ;;  %v1732_v51 = vpop.eup %1731  ;;  %1733 = vpow2.f32 %v1083_v48 }
 0x2b7   :  { %v622_v45 = vsel %vm147_vm0, %v2278_v20, 0.0  ;;  %v2291_v0 = vmul.f32 %v1732_v51, %v2240_v63 }
 0x2b8   :  { %623 = vadd.xlane.f32.xlu0 %v622_v45  ;;  %v973_v16 = vsel %vm147_vm0, %v2284_v56, 0.0 }
 0x2b9   :  { %v856_v54 = vsel %vm147_vm0, %v2291_v0, 0.0 }
 0x2ba   :  { %1679 = vrot.lane.b32.xlu1 %v2043_v34, %s1947_s13 }
 0x2bc   :  { %v1734_v60 = vpop.eup %1733 }
 0x2bd   :  { %v2299_v1 = vmul.f32 %v1734_v60, %v2240_v63 }
 0x2bf   :  { %v1090_v10 = vsel %vm147_vm0, %v2299_v1, 0.0 }
 0x2c0   :  { %974 = vadd.xlane.f32.xlu0 %v973_v16  ;;  %1669 = vrot.lane.b32.xlu2 %v2043_v34, %s1948_s14 }
 0x2c2   :  { %1684 = vrot.lane.b32.xlu1 %v2043_v34, %s1949_s15 }
 0x2c8   :  { %857 = vadd.xlane.f32.xlu0 %v856_v54 }
 0x2dc   :  { %1674 = vrot.lane.b32.xlu0 %v2043_v34, %s1950_s16 }
 0x2e4   :  { %1689 = vrot.lane.b32.xlu0 %v2043_v34, %s1951_s17 }
 0x2e9   :  { %1091 = vadd.xlane.f32.xlu2 %v1090_v10 }
 0x2f3   :  { %v284_v11 = vpop.xlane.xlu0 %283 }
 0x2f4   :  { %v288_v4 = vadd.f32 1e-16, %v284_v11 }
 0x2f6   :  { %1735 = vrcp.f32 %v288_v4  ;;  %v301_v29 = vand.u32 2147483648, %v288_v4  ;;  %v299_v14 = vand.u32 2147483647, %v288_v4  ;;  %vm295_vm8 = vweird.f32 %v288_v4 }
 0x2f8   :  { %v302_v12 = vor.u32 1.1754944e-38, %v301_v29  ;;  %vm300_vm6 = vcmp.eq.f32.partialorder %v299_v14, 8.507059e+37 }
 0x2fb   :  { %v972_v35 = vpop.xlane.xlu1 %971 }
 0x2fc   :  { %v1736_v61 = vpop.eup %1735  ;;  %v504_v53 = vpop.xlane.xlu0 %503 }
 0x2fd   :  { %v291_v6 = vmul.f32 %v1736_v61, %v288_v4  ;;  %vm296_vm7 = vweird.f32 %v1736_v61  ;;  %v2307_v8 = vadd.f32 1e-16, %v504_v53 }
 0x2fe   :  { %vm297_vm5 = vmor %vm295_vm8, %vm296_vm7 }
 0x2ff   :  { %v292_v39 = vsub.f32 1.0, %v291_v6 }
 0x301   :  { %v293_v57 = vmul.f32 %v1736_v61, %v292_v39 }
 0x303   :  { %v387_v19 = vpop.xlane.xlu2 %386  ;;  %v294_v27 = vadd.f32 %v1736_v61, %v293_v57 }
 0x304   :  { %v391_v34 = vadd.f32 1e-16, %v387_v19 }
 0x305   :  { %v298_v15 = vsel %vm297_vm5, %v1736_v61, %v294_v27 }
 0x306   :  { %1737 = vrcp.f32 %v391_v34  ;;  %v303_v40 = vsel %vm300_vm6, %v302_v12, %v298_v15  ;;  %v404_v38 = vand.u32 2147483648, %v391_v34  ;;  %v402_v43 = vand.u32 2147483647, %v391_v34 }
 0x307   :  { %v304_v50 = vmul.f32 %v303_v40, %v2201_v9  ;;  %v2310_v9 = vadd.f32 1e-16, %v972_v35  ;;  %vm398_vm10 = vweird.f32 %v391_v34 }
 0x308   :  { %v405_v54 = vor.u32 1.1754944e-38, %v404_v38  ;;  %vm403_vm12 = vcmp.eq.f32.partialorder %v402_v43, 8.507059e+37 }
 0x309   :  { %1580 = vmatmul.msk.f32.vlgmr.msra.gmra.mxu3 %vm147_vm0, %v304_v50 }
 0x30b   :  { %v2305_v42 = vpop.xlane.xlu2 %737  ;;  %v621_v21 = vpop.xlane.xlu0 %620 }
 0x30c   :  { %v1738_v13 = vpop.eup %1737  ;;  %v625_v47 = vadd.f32 1e-16, %v621_v21 }
 0x30d   :  { %v394_v22 = vmul.f32 %v1738_v13, %v391_v34  ;;  %vm399_vm9 = vweird.f32 %v1738_v13 }
 0x30e   :  { %1739 = vrcp.f32 %v625_v47  ;;  %vm400_vm11 = vmor %vm398_vm10, %vm399_vm9  ;;  %vm632_vm14 = vweird.f32 %v625_v47  ;;  %v636_v27 = vand.u32 2147483647, %v625_v47 }
 0x30f   :  { %v395_v23 = vsub.f32 1.0, %v394_v22  ;;  %1741 = vrcp.f32 %v2307_v8 }
 0x310   :  { %1743 = vrcp.f32 %v2310_v9  ;;  %vm637_vm8 = vcmp.eq.f32.partialorder %v636_v27, 8.507059e+37 }
 0x311   :  { %v396_v41 = vmul.f32 %v1738_v13, %v395_v23 }
 0x313   :  { %v855_v44 = vpop.xlane.xlu0 %854  ;;  %v287_v59 = vpop.xlane.xlu2 %286  ;;  %v397_v45 = vadd.f32 %v1738_v13, %v396_v41 }
 0x314   :  { %v2312_v46 = vadd.f32 1e-16, %v287_v59  ;;  %v1740_v16 = vpop.eup %1739  ;;  %v2328_v53 = vadd.f32 1e-16, %v855_v44  ;;  %v2344_v43 = vpop.xlane.xlu1 %740 }
 0x315   :  { %v401_v51 = vsel %vm400_vm11, %v1738_v13, %v397_v45  ;;  %v2314_v30 = vpop.eup %1741  ;;  %v628_v36 = vmul.f32 %v1740_v16, %v625_v47  ;;  %vm633_vm13 = vweird.f32 %v1740_v16  ;;  %vm515_vm11 = vweird.f32 %v2307_v8 }
 0x316   :  { %v406_v48 = vsel %vm403_vm12, %v405_v54, %v401_v51  ;;  %1745 = vrcp.f32 %v2312_v46  ;;  %v511_v11 = vmul.f32 %v2314_v30, %v2307_v8  ;;  %v2326_v57 = vpop.eup %1743  ;;  %vm2334_vm15 = vmor %vm632_vm14, %vm633_vm13  ;;  %v316_v13 = vand.u32 2147483648, %v2312_v46 }
 0x317   :  { %v629_v60 = vsub.f32 1.0, %v628_v36  ;;  %v407_v10 = vmul.f32 %v406_v48, %v2220_v37  ;;  %v638_v37 = vand.u32 2147483648, %v625_v47  ;;  %v979_v12 = vmul.f32 %v2326_v57, %v2310_v9 }
 0x318   :  { %v512_v29 = vsub.f32 1.0, %v511_v11  ;;  %v314_v41 = vand.u32 2147483647, %v2312_v46  ;;  %vm310_vm5 = vweird.f32 %v2312_v46  ;;  %vm516_vm6 = vweird.f32 %v2314_v30 }
 0x319   :  { %v630_v4 = vmul.f32 %v1740_v16, %v629_v60  ;;  %1582 = vmatmul.msk.f32.vlgmr.msrb.gmra.mxu1 %vm147_vm0, %v407_v10  ;;  %v639_v22 = vor.u32 1.1754944e-38, %v638_v37  ;;  %v980_v38 = vsub.f32 1.0, %v979_v12  ;;  %v317_v60 = vor.u32 1.1754944e-38, %v316_v13  ;;  %vm2367_vm12 = vmor %vm515_vm11, %vm516_vm6 }
 0x31a   :  { %v513_v40 = vmul.f32 %v2314_v30, %v512_v29  ;;  %v521_v11 = vand.u32 2147483648, %v2307_v8  ;;  %vm315_vm10 = vcmp.eq.f32.partialorder %v314_v41, 8.507059e+37  ;;  %vm984_vm14 = vweird.f32 %v2326_v57 }
 0x31b   :  { %v2322_v61 = vpop.xlane.xlu0 %1088  ;;  %v507_v6 = vpop.xlane.xlu2 %506  ;;  %v631_v19 = vadd.f32 %v1740_v16, %v630_v4 }
 0x31c   :  { %v2324_v39 = vadd.f32 1e-16, %v507_v6  ;;  %v1746_v14 = vpop.eup %1745  ;;  %v514_v54 = vadd.f32 %v2314_v30, %v513_v40  ;;  %v987_v40 = vand.u32 2147483647, %v2310_v9 }
 0x31d   :  { %v306_v34 = vmul.f32 %v1746_v14, %v2312_v46  ;;  %v635_v21 = vsel %vm2334_vm15, %v1740_v16, %v631_v19  ;;  %vm311_vm7 = vweird.f32 %v1746_v14  ;;  %v519_v19 = vand.u32 2147483647, %v2307_v8 }
 0x31e   :  { %1747 = vrcp.f32 %v2324_v39  ;;  %v640_v45 = vsel %vm637_vm8, %v639_v22, %v635_v21  ;;  %vm312_vm9 = vmor %vm310_vm5, %vm311_vm7  ;;  %v518_v27 = vsel %vm2367_vm12, %v2314_v30, %v514_v54  ;;  %v522_v8 = vor.u32 1.1754944e-38, %v521_v11 }
 0x31f   :  { %1749 = vrcp.f32 %v2328_v53  ;;  %v307_v50 = vsub.f32 1.0, %v306_v34  ;;  %v641_v46 = vmul.f32 %v640_v45, %v2231_v62  ;;  %vm520_vm13 = vcmp.eq.f32.partialorder %v519_v19, 8.507059e+37 }
 0x320   :  { %vm983_vm15 = vweird.f32 %v2310_v9  ;;  %vm530_vm5 = vweird.f32 %v2324_v39 }
 0x321   :  { %v308_v35 = vmul.f32 %v1746_v14, %v307_v50  ;;  %v989_v50 = vand.u32 2147483648, %v2310_v9 }
 0x323   :  { %v390_v23 = vpop.xlane.xlu0 %389  ;;  %v1670_v47 = vpop.permute.xlu2 %1669  ;;  %v309_v16 = vadd.f32 %v1746_v14, %v308_v35  ;;  %v2389_v35 = vadd.f32 1e-16, %v2305_v42  ;;  %v536_v42 = vand.u32 2147483648, %v2324_v39 }
 0x324   :  { %v2346_v44 = vadd.f32 1e-16, %v390_v23  ;;  %v1671_v59 = vunpack.i.l.bf16 %v1670_v47  ;;  %v2348_v51 = vpop.eup %1747  ;;  %v1672_v48 = vunpack.i.h.bf16 %v1670_v47  ;;  %v523_v23 = vsel %vm520_vm13, %v522_v8, %v518_v27 }
 0x325   :  { %v526_v36 = vmul.f32 %v2348_v51, %v2324_v39  ;;  %v2357_v10 = vpop.eup %1749  ;;  %v313_v4 = vsel %vm312_vm9, %v1746_v14, %v309_v16  ;;  %v981_v14 = vmul.f32 %v2326_v57, %v980_v38  ;;  %vm531_vm7 = vweird.f32 %v2348_v51 }
 0x326   :  { %1751 = vrcp.f32 %v2346_v44  ;;  %683 = vmatpush.msrb.mxu0 %v1671_v59  ;;  %v318_v29 = vsel %vm315_vm10, %v317_v60, %v313_v4  ;;  %v862_v62 = vmul.f32 %v2357_v10, %v2328_v53  ;;  %v524_v16 = vmul.f32 %v523_v23, %v2211_v58  ;;  %vm2407_vm6 = vmor %vm530_vm5, %vm531_vm7 }
 0x327   :  { %v527_v6 = vsub.f32 1.0, %v526_v36  ;;  %v319_v37 = vmul.f32 %v318_v29, %v2244_v5  ;;  %v2386_v47 = vadd.f32 %v2326_v57, %v981_v14  ;;  %v419_v54 = vand.u32 2147483648, %v2346_v44  ;;  %vm2433_vm7 = vmor %vm983_vm15, %vm984_vm14 }
 0x328   :  { %684 = vmatpush.msrb.mxu0 %v1672_v48  ;;  %v863_v41 = vsub.f32 1.0, %v862_v62  ;;  %v534_v36 = vand.u32 2147483647, %v2324_v39  ;;  %v417_v60 = vand.u32 2147483647, %v2346_v44  ;;  %v872_v4 = vand.u32 2147483648, %v2328_v53 }
 0x329   :  { %1586 = vmatmul.msk.f32.vlgmr.msrb.gmra.mxu0 %vm147_vm0, %v641_v46  ;;  %1581 = vmatmul.msk.f32.gmra.mxu3 %vm147_vm0, %v319_v37  ;;  %v528_v12 = vmul.f32 %v2348_v51, %v527_v6  ;;  %v2405_v58 = vadd.f32 1e-16, %v2344_v43  ;;  %vm867_vm9 = vweird.f32 %v2357_v10  ;;  %vm413_vm10 = vweird.f32 %v2346_v44 }
 0x32a   :  { %v864_v11 = vmul.f32 %v2357_v10, %v863_v41  ;;  %v420_v34 = vor.u32 1.1754944e-38, %v419_v54  ;;  %vm535_vm12 = vcmp.eq.f32.partialorder %v534_v36, 8.507059e+37  ;;  %v537_v14 = vor.u32 1.1754944e-38, %v536_v42 }
 0x32b   :  { %v624_v5 = vpop.xlane.xlu0 %623  ;;  %v529_v45 = vadd.f32 %v2348_v51, %v528_v12  ;;  %vm418_vm13 = vcmp.eq.f32.partialorder %v417_v60, 8.507059e+37  ;;  %v2424_v12 = vadd.f32 1e-16, %v2322_v61  ;;  %vm866_vm5 = vweird.f32 %v2328_v53 }
 0x32c   :  { %v1752_v15 = vpop.eup %1751  ;;  %v1680_v21 = vpop.permute.xlu1 %1679  ;;  %v2381_v13 = vadd.f32 1e-16, %v624_v5  ;;  %v870_v61 = vand.u32 2147483647, %v2328_v53  ;;  %v873_v54 = vor.u32 1.1754944e-38, %v872_v4 }
 0x32d   :  { %v409_v22 = vmul.f32 %v1752_v15, %v2346_v44  ;;  %v1681_v30 = vunpack.i.l.bf16 %v1680_v21  ;;  %v1682_v59 = vunpack.i.h.bf16 %v1680_v21  ;;  %vm414_vm8 = vweird.f32 %v1752_v15 }
 0x32e   :  { %1753 = vrcp.f32 %v2381_v13  ;;  %v533_v39 = vsel %vm2407_vm6, %v2348_v51, %v529_v45  ;;  %vm415_vm11 = vmor %vm413_vm10, %vm414_vm8  ;;  %v865_v44 = vadd.f32 %v2357_v10, %v864_v11  ;;  %vm2437_vm8 = vcmp.eq.f32.partialorder %v987_v40, 8.507059e+37 }
 0x32f   :  { %v410_v38 = vsub.f32 1.0, %v409_v22  ;;  %1034 = vmatpush.msra.mxu3 %v1681_v30  ;;  %1755 = vrcp.f32 %v2389_v35  ;;  %v538_v51 = vsel %vm535_vm12, %v537_v14, %v533_v39  ;;  %vm2446_vm6 = vmor %vm866_vm5, %vm867_vm9  ;;  %v651_v40 = vand.u32 2147483647, %v2381_v13 }
 0x330   :  { %v869_v53 = vsel %vm2446_vm6, %v2357_v10, %v865_v44  ;;  %vm647_vm15 = vweird.f32 %v2381_v13  ;;  %vm871_vm9 = vcmp.eq.f32.partialorder %v870_v61, 8.507059e+37 }
 0x331   :  { %1035 = vmatpush.msra.mxu3 %v1682_v59  ;;  %v411_v48 = vmul.f32 %v1752_v15, %v410_v38  ;;  %v539_v59 = vmul.f32 %v538_v51, %v2260_v28  ;;  %v986_v28 = vsel %vm2433_vm7, %v2326_v57, %v2386_v47  ;;  %v874_v60 = vsel %vm871_vm9, %v873_v54, %v869_v53 }
 0x332   :  { %1584 = vmatmul.msk.f32.vlgmr.msrb.gmra.mxu3 %vm147_vm0, %v524_v16  ;;  %v990_v16 = vor.u32 1.1754944e-38, %v989_v50  ;;  %v875_v39 = vmul.f32 %v874_v60, %v2247_v52 }
 0x333   :  { %v975_v6 = vpop.xlane.xlu0 %974  ;;  %v412_v29 = vadd.f32 %v1752_v15, %v411_v48 }
 0x334   :  { %v1754_v19 = vpop.eup %1753  ;;  %v1685_v37 = vpop.permute.xlu1 %1684  ;;  %v2417_v43 = vadd.f32 1e-16, %v975_v6  ;;  %v991_v4 = vsel %vm2437_vm8, %v990_v16, %v986_v28 }
 0x335   :  { %v643_v62 = vmul.f32 %v1754_v19, %v2381_v13  ;;  %v1686_v27 = vunpack.i.l.bf16 %v1685_v37  ;;  %v416_v5 = vsel %vm415_vm11, %v1752_v15, %v412_v29  ;;  %v1687_v22 = vunpack.i.h.bf16 %v1685_v37  ;;  %v2427_v23 = vpop.eup %1755 }
 0x336   :  { %1757 = vrcp.f32 %v2417_v43  ;;  %v421_v8 = vsel %vm418_vm13, %v420_v34, %v416_v5  ;;  %vm648_vm14 = vweird.f32 %v1754_v19  ;;  %v745_v42 = vmul.f32 %v2427_v23, %v2389_v35 }
 0x337   :  { %v644_v21 = vsub.f32 1.0, %v643_v62  ;;  %917 = vmatpush.msra.mxu1 %v1686_v27  ;;  %v422_v30 = vmul.f32 %v421_v8, %v2272_v31  ;;  %v653_v31 = vand.u32 2147483648, %v2381_v13  ;;  %1759 = vrcp.f32 %v2405_v58  ;;  %vm649_vm10 = vmor %vm647_vm15, %vm648_vm14 }
 0x338   :  { %1761 = vrcp.f32 %v2424_v12  ;;  %vm652_vm11 = vcmp.eq.f32.partialorder %v651_v40, 8.507059e+37  ;;  %v746_v29 = vsub.f32 1.0, %v745_v42  ;;  %v1004_v37 = vand.u32 2147483648, %v2417_v43 }
 0x339   :  { %918 = vmatpush.msra.mxu1 %v1687_v22  ;;  %v645_v45 = vmul.f32 %v1754_v19, %v644_v21  ;;  %v654_v48 = vor.u32 1.1754944e-38, %v653_v31  ;;  %v1002_v62 = vand.u32 2147483647, %v2417_v43  ;;  %vm998_vm13 = vweird.f32 %v2417_v43 }
 0x33a   :  { %1583 = vmatmul.msk.f32.gmra.mxu1 %vm147_vm0, %v422_v30  ;;  %1585 = vmatmul.msk.f32.gmra.mxu3 %vm147_vm0, %v539_v59  ;;  %v747_v27 = vmul.f32 %v2427_v23, %v746_v29  ;;  %v1005_v44 = vor.u32 1.1754944e-38, %v1004_v37  ;;  %vm750_vm5 = vweird.f32 %v2427_v23  ;;  %v755_v31 = vand.u32 2147483648, %v2389_v35 }
 0x33b   :  { %v858_v9 = vpop.xlane.xlu0 %857  ;;  %v646_v50 = vadd.f32 %v1754_v19, %v645_v45  ;;  %vm1003_vm8 = vcmp.eq.f32.partialorder %v1002_v62, 8.507059e+37  ;;  %vm749_vm14 = vweird.f32 %v2389_v35  ;;  %v753_v45 = vand.u32 2147483647, %v2389_v35 }
 0x33c   :  { %v1758_v36 = vpop.eup %1757  ;;  %v860_v10 = vadd.f32 1e-16, %v858_v9  ;;  %v748_v61 = vadd.f32 %v2427_v23, %v747_v27  ;;  %vm2497_vm9 = vmor %vm749_vm14, %vm750_vm5  ;;  %v756_v35 = vor.u32 1.1754944e-38, %v755_v31 }
 0x33d   :  { %v994_v57 = vmul.f32 %v1758_v36, %v2417_v43  ;;  %v650_v47 = vsel %vm649_vm10, %v1754_v19, %v646_v50  ;;  %v2473_v6 = vpop.eup %1759  ;;  %v992_v19 = vmul.f32 %v991_v4, %v2208_v18  ;;  %vm999_vm12 = vweird.f32 %v1758_v36  ;;  %v1180_v4 = vld [vmem:[#allocation9 + $0x60] sm:$0xff] }
 0x33e   :  { %1763 = vrcp.f32 %v860_v10  ;;  %v655_v11 = vsel %vm652_vm11, %v654_v48, %v650_v47  ;;  %v2477_v34 = vpop.eup %1761  ;;  %v760_v5 = vmul.f32 %v2473_v6, %v2405_v58  ;;  %vm1000_vm7 = vmor %vm998_vm13, %vm999_vm12  ;;  %v887_v41 = vand.u32 2147483648, %v860_v10 }
 0x33f   :  { %v995_v13 = vsub.f32 1.0, %v994_v57  ;;  %v656_v46 = vmul.f32 %v655_v11, %v2278_v20  ;;  %v1096_v18 = vmul.f32 %v2477_v34, %v2424_v12  ;;  %v885_v59 = vand.u32 2147483647, %v860_v10 }
 0x340   :  { %v761_v43 = vsub.f32 1.0, %v760_v5  ;;  %vm881_vm15 = vweird.f32 %v860_v10  ;;  %v888_v53 = vor.u32 1.1754944e-38, %v887_v41  ;;  %v752_v28 = vsel %vm2497_vm9, %v2427_v23, %v748_v61 }
 0x341   :  { %1587 = vmatmul.msk.f32.gmra.mxu0 %vm147_vm0, %v656_v46  ;;  %v996_v14 = vmul.f32 %v1758_v36, %v995_v13  ;;  %v1097_v15 = vsub.f32 1.0, %v1096_v18  ;;  %vm886_vm11 = vcmp.eq.f32.partialorder %v885_v59, 8.507059e+37  ;;  %vm754_vm12 = vcmp.eq.f32.partialorder %v753_v45, 8.507059e+37 }
 0x342   :  { %1590 = vmatmul.msk.f32.vlgmr.msra.gmra.mxu1 %vm147_vm0, %v875_v39  ;;  %1592 = vmatmul.msk.f32.vlgmr.msra.gmra.mxu3 %vm147_vm0, %v992_v19  ;;  %v762_v54 = vmul.f32 %v2473_v6, %v761_v43  ;;  %vm1101_vm13 = vweird.f32 %v2477_v34  ;;  %v757_v48 = vsel %vm754_vm12, %v756_v35, %v752_v28  ;;  %v1106_v23 = vand.u32 2147483648, %v2424_v12 }
 0x343   :  { %v997_v20 = vadd.f32 %v1758_v36, %v996_v14  ;;  %v1098_v16 = vmul.f32 %v2477_v34, %v1097_v15  ;;  %v770_v11 = vand.u32 2147483648, %v2405_v58  ;;  %v758_v13 = vmul.f32 %v757_v48, %v2228_v49  ;;  %v1184_v48 = vld [vmem:[#allocation9 + $0x80] sm:$0xff] }
 0x344   :  { %v1764_v52 = vpop.eup %1763  ;;  %v763_v47 = vadd.f32 %v2473_v6, %v762_v54  ;;  %v768_v46 = vand.u32 2147483647, %v2405_v58  ;;  %v1107_v37 = vor.u32 1.1754944e-38, %v1106_v23  ;;  %v1182_v23 = vld [vmem:[#allocation9 + $0x70] sm:$0xff] }
 0x345   :  { %v877_v8 = vmul.f32 %v1764_v52, %v860_v10  ;;  %v1001_v51 = vsel %vm1000_vm7, %v1758_v36, %v997_v20  ;;  %vm882_vm6 = vweird.f32 %v1764_v52  ;;  %v1099_v57 = vadd.f32 %v2477_v34, %v1098_v16 }
 0x346   :  { %v1006_v21 = vsel %vm1003_vm8, %v1005_v44, %v1001_v51  ;;  %vm883_vm10 = vmor %vm881_vm15, %vm882_vm6  ;;  %vm765_vm7 = vweird.f32 %v2473_v6  ;;  %vm1100_vm8 = vweird.f32 %v2424_v12  ;;  %vm764_vm6 = vweird.f32 %v2405_v58 }
 0x347   :  { %v878_v22 = vsub.f32 1.0, %v877_v8  ;;  %v1007_v30 = vmul.f32 %v1006_v21, %v2284_v56  ;;  %vm2515_vm5 = vmor %vm1100_vm8, %vm1101_vm13  ;;  %v771_v19 = vor.u32 1.1754944e-38, %v770_v11  ;;  %vm769_vm9 = vcmp.eq.f32.partialorder %v768_v46, 8.507059e+37 }
 0x348   :  { %vm766_vm14 = vmor %vm764_vm6, %vm765_vm7  ;;  %v1103_v39 = vsel %vm2515_vm5, %v2477_v34, %v1099_v57  ;;  %vm349_vm7 = vcmask 64512   ;;  %vm466_vm8 = vcmask 130112   ;;  %vm583_vm5 = vcmask 195712  }
 0x349   :  { %v879_v38 = vmul.f32 %v1764_v52, %v878_v22  ;;  %v767_v29 = vsel %vm766_vm14, %v2473_v6, %v763_v47  ;;  %v1183_v47 = vld [vmem:[#allocation9 + $0x78] sm:$0xff]  ;;  %vm700_vm6 = vcmask 261312   ;;  %vm817_vm14 = vcmask 326912  }
 0x34a   :  { %1593 = vmatmul.msk.f32.gmra.mxu3 %vm147_vm0, %v1007_v30  ;;  %v772_v14 = vsel %vm769_vm9, %v771_v19, %v767_v29  ;;  %v1219_v29 = vld [vmem:[#allocation9 + $0xb0] sm:$0xff]  ;;  %vm1051_vm9 = vcmask 458112  }
 0x34b   :  { %v880_v40 = vadd.f32 %v1764_v52, %v879_v38  ;;  %v773_v58 = vmul.f32 %v772_v14, %v2250_v55  ;;  %1238 = vmatpush.msrb.mxu1 %v1219_v29 }
 0x34d   :  { %v884_v9 = vsel %vm883_vm10, %v1764_v52, %v880_v40 }
 0x34e   :  { %v1675_v50 = vpop.permute.xlu0 %1674  ;;  %v889_v36 = vsel %vm886_vm11, %v888_v53, %v884_v9 }
 0x34f   :  { %v1676_v42 = vunpack.i.l.bf16 %v1675_v50  ;;  %v890_v10 = vmul.f32 %v889_v36, %v2291_v0  ;;  %v1677_v60 = vunpack.i.h.bf16 %v1675_v50  ;;  %v1104_v0 = vand.u32 2147483647, %v2424_v12 }
 0x351   :  { %800 = vmatpush.msrb.mxu2 %v1676_v42  ;;  %1591 = vmatmul.msk.f32.gmra.mxu1 %vm147_vm0, %v890_v10  ;;  %vm1105_vm15 = vcmp.eq.f32.partialorder %v1104_v0, 8.507059e+37  ;;  %v1186_v42 = vld [vmem:[#allocation9 + $0x90] sm:$0xff]  ;;  %v1185_v10 = vld [vmem:[#allocation9 + $0x88] sm:$0xff]  ;;  %v1179_v0 = vld [vmem:[#allocation9 + $0x58] sm:$0xff] }
 0x352   :  { %v1108_v62 = vsel %vm1105_vm15, %v1107_v37, %v1103_v39  ;;  %v1218_v39 = vld [vmem:[#allocation9 + $0xa8] sm:$0xff]  ;;  %v1217_v37 = vld [vmem:[#allocation9 + $0xa0] sm:$0xff]  ;;  %vm934_vm15 = vcmask 392512  }
 0x353   :  { %801 = vmatpush.msrb.mxu2 %v1677_v60  ;;  %v1109_v52 = vmul.f32 %v1108_v62, %v2263_v17  ;;  %v1181_v60 = vld [vmem:[#allocation9 + $0x68] sm:$0xff]  ;;  %1239 = vmatpush.msrb.mxu1 %v1218_v39  ;;  %v1698_v62 = vld [vmem:[#allocation9 + $0x50] ss:$0 sm:$0xff] }
 0x354   :  { %1588 = vmatmul.msk.f32.vlgmr.msrb.gmra.mxu2 %vm147_vm0, %v758_v13 }
 0x355   :  { %1201 = vmatpush.msra.mxu2 %v1186_v42  ;;  %1240 = vmatpush.msrb.mxu1 %v1217_v37 }
 0x356   :  { %v1690_v12 = vpop.permute.xlu0 %1689 }
 0x357   :  { %v1691_v49 = vunpack.i.l.bf16 %v1690_v12  ;;  %v1692_v20 = vunpack.i.h.bf16 %v1690_v12  ;;  %1202 = vmatpush.msra.mxu2 %v1185_v10 }
 0x359   :  { %1151 = vmatpush.msra.mxu0 %v1691_v49  ;;  %1203 = vmatpush.msra.mxu2 %v1184_v48 }
 0x35b   :  { %1152 = vmatpush.msra.mxu0 %v1692_v20  ;;  %1204 = vmatpush.msra.mxu2 %v1183_v47  ;;  %v1959_v47 = vmov 1.0  }
 0x35c   :  { %1589 = vmatmul.msk.f32.gmra.mxu2 %vm147_vm0, %v773_v58  ;;  %v1092_v6 = vpop.xlane.xlu2 %1091  ;;  %1594 = vmatmul.msk.f32.vlgmr.msra.gmra.mxu0 %vm147_vm0, %v1109_v52 }
 0x35d   :  { %v1094_v34 = vadd.f32 1e-16, %v1092_v6  ;;  %1205 = vmatpush.msra.mxu2 %v1182_v23  ;;  %1602 = vmatpush.msk.msrb.mxu0 %vm86_vm3, %v1959_v47 }
 0x35f   :  { %1765 = vrcp.f32 %v1094_v34  ;;  %v1121_v44 = vand.u32 2147483648, %v1094_v34  ;;  %v1119_v51 = vand.u32 2147483647, %v1094_v34  ;;  %vm1115_vm11 = vweird.f32 %v1094_v34  ;;  %1206 = vmatpush.msra.mxu2 %v1181_v60  ;;  %1603 = vmatpush.msk.msrb.mxu0 %vm85_vm4, %v1959_v47 }
 0x361   :  { %v1122_v55 = vor.u32 1.1754944e-38, %v1121_v44  ;;  %vm1120_vm13 = vcmp.eq.f32.partialorder %v1119_v51, 8.507059e+37  ;;  %1207 = vmatpush.msra.mxu2 %v1180_v4  ;;  %v1958_v51 = vmov 1  }
 0x362   :  { %1693 = vset.pattern.permute.xlu1 %v1958_v51  ;;  %1694 = vset.pattern.permute.xlu2 %v1958_v51 }
 0x363   :  { %1208 = vmatpush.msra.mxu2 %v1179_v0 }
 0x365   :  { %v1766_v27 = vpop.eup %1765 }
 0x366   :  { %v1111_v5 = vmul.f32 %v1766_v27, %v1094_v34  ;;  %vm1116_vm10 = vweird.f32 %v1766_v27 }
 0x367   :  { %vm1117_vm12 = vmor %vm1115_vm11, %vm1116_vm10  ;;  %vm1168_vm10 = vcmask 523712  }
 0x368   :  { %v1112_v18 = vsub.f32 1.0, %v1111_v5 }
 0x36a   :  { %v1113_v8 = vmul.f32 %v1766_v27, %v1112_v18 }
 0x36c   :  { %v1114_v21 = vadd.f32 %v1766_v27, %v1113_v8  ;;  %v1216_v8 = vld [vmem:[#allocation9 + $0x98] sm:$0xff] }
 0x36d   :  { %1241 = vmatpush.msrb.mxu1 %v1216_v8  ;;  %v1445_v8 = vld [vmem:[#allocation9 + $0xc0] sm:$0xff] }
 0x36e   :  { %v1118_v17 = vsel %vm1117_vm12, %v1766_v27, %v1114_v21 }
 0x36f   :  { %v1123_v22 = vsel %vm1120_vm13, %v1122_v55, %v1118_v17 }
 0x370   :  { %v1124_v30 = vmul.f32 %v1123_v22, %v2299_v1 }
 0x372   :  { %1595 = vmatmul.msk.f32.gmra.mxu0 %vm147_vm0, %v1124_v30 }
 0x38c   :  { %v343_v43 = vpop.f32.mrf.mxu3 }
 0x38d   :  { %350 = vst.msk [vmem:[#allocation2] sm:$0xff] %vm349_vm7, %v343_v43 }
 0x396   :  { %v452_v15 = vpop.f32.mrf.mxu1 }
 0x397   :  { %460 = vrot.lane.b32.xlu1 %v452_v15, %s1933_s0 }
 0x3a6   :  { %v686_v41 = vpop.f32.mrf.mxu0 }
 0x3a7   :  { %694 = vrot.lane.b32.xlu1 %v686_v41, %s1952_s18 }
 0x3ac   :  { %v346_v61 = vpop.f32.mrf.mxu3 }
 0x3ad   :  { %351 = vst.msk [vmem:[#allocation2 + $0x8] sm:$0xff] %vm349_vm7, %v346_v61 }
 0x3b5   :  { %v569_v31 = vpop.f32.mrf.mxu3 }
 0x3b7   :  { %v455_v38 = vpop.f32.mrf.mxu1 }
 0x3b8   :  { %462 = vrot.lane.b32.xlu1 %v455_v38, %s1933_s0 }
 0x3bd   :  { %v572_v1 = vpop.f32.mrf.mxu3 }
 0x3be   :  { %v689_v59 = vpop.f32.mrf.mxu0 }
 0x3bf   :  { %v920_v45 = vpop.f32.mrf.mxu1 }
 0x3c0   :  { %696 = vrot.lane.b32.xlu1 %v689_v59, %s1952_s18 }
 0x3c5   :  { %v1037_v40 = vpop.f32.mrf.mxu3 }
 0x3c6   :  { %1045 = vrot.lane.b32.xlu2 %v1037_v40, %s1953_s19 }
 0x3c8   :  { %928 = vrot.lane.b32.xlu1 %v920_v45, %s1954_s20 }
 0x3cd   :  { %v1040_v56 = vpop.f32.mrf.mxu3 }
 0x3ce   :  { %v923_v16 = vpop.f32.mrf.mxu1  ;;  %1047 = vrot.lane.b32.xlu2 %v1040_v56, %s1953_s19 }
 0x3d0   :  { %930 = vrot.lane.b32.xlu1 %v923_v16, %s1954_s20 }
 0x3d7   :  { %v803_v53 = vpop.f32.mrf.mxu2 }
 0x3d8   :  { %811 = vrot.lane.b32.xlu0 %v803_v53, %s1955_s21 }
 0x3d9   :  { %v1154_v54 = vpop.f32.mrf.mxu0 }
 0x3df   :  { %v806_v28 = vpop.f32.mrf.mxu2 }
 0x3e0   :  { %813 = vrot.lane.b32.xlu0 %v806_v28, %s1955_s21 }
 0x3e8   :  { %1162 = vrot.lane.b32.xlu0 %v1154_v54, %s1956_s22 }
 0x3ef   :  { %v1157_v9 = vpop.f32.mrf.mxu0 }
 0x3f0   :  { %577 = vrot.lane.b32.xlu0 %v569_v31, %s1957_s23 }
 0x3f8   :  { %579 = vrot.lane.b32.xlu0 %v572_v1, %s1957_s23 }
 0x400   :  { %1164 = vrot.lane.b32.xlu0 %v1157_v9, %s1956_s22 }
 0x409   :  { %v461_v35 = vpop.permute.xlu1 %460 }
 0x40a   :  { %467 = vst.msk [vmem:[#allocation2] sm:$0xff] %vm466_vm8, %v461_v35 }
 0x419   :  { %v695_v50 = vpop.permute.xlu1 %694 }
 0x420   :  { %v1046_v49 = vpop.permute.xlu2 %1045 }
 0x428   :  { %v1048_v58 = vpop.permute.xlu2 %1047 }
 0x42a   :  { %v463_v36 = vpop.permute.xlu1 %462 }
 0x42b   :  { %468 = vst.msk [vmem:[#allocation2 + $0x8] sm:$0xff] %vm466_vm8, %v463_v36 }
 0x432   :  { %v697_v13 = vpop.permute.xlu1 %696 }
 0x43a   :  { %v929_v12 = vpop.permute.xlu1 %928 }
 0x442   :  { %v931_v20 = vpop.permute.xlu1 %930 }
 0x44a   :  { %v812_v57 = vpop.permute.xlu0 %811 }
 0x452   :  { %v814_v11 = vpop.permute.xlu0 %813 }
 0x45a   :  { %v1163_v46 = vpop.permute.xlu0 %1162 }
 0x462   :  { %v578_v19 = vpop.permute.xlu0 %577 }
 0x463   :  { %584 = vst.msk [vmem:[#allocation2] sm:$0xff] %vm583_vm5, %v578_v19 }
 0x464   :  { %701 = vst.msk [vmem:[#allocation2] sm:$0xff] %vm700_vm6, %v695_v50 }
 0x465   :  { %818 = vst.msk [vmem:[#allocation2] sm:$0xff] %vm817_vm14, %v812_v57 }
 0x466   :  { %935 = vst.msk [vmem:[#allocation2] sm:$0xff] %vm934_vm15, %v929_v12 }
 0x467   :  { %1052 = vst.msk [vmem:[#allocation2] sm:$0xff] %vm1051_vm9, %v1046_v49 }
 0x468   :  { %1169 = vst.msk [vmem:[#allocation2] sm:$0xff] %vm1168_vm10, %v1163_v46 }
 0x46a   :  { %v580_v14 = vpop.permute.xlu0 %579 }
 0x46b   :  { %585 = vst.msk [vmem:[#allocation2 + $0x8] sm:$0xff] %vm583_vm5, %v580_v14 }
 0x46c   :  { %702 = vst.msk [vmem:[#allocation2 + $0x8] sm:$0xff] %vm700_vm6, %v697_v13 }
 0x46d   :  { %819 = vst.msk [vmem:[#allocation2 + $0x8] sm:$0xff] %vm817_vm14, %v814_v11 }
 0x46e   :  { %936 = vst.msk [vmem:[#allocation2 + $0x8] sm:$0xff] %vm934_vm15, %v931_v20  ;;  %vm1419_vm15 = vcmask 253952  }
 0x46f   :  { %1053 = vst.msk [vmem:[#allocation2 + $0x8] sm:$0xff] %vm1051_vm9, %v1048_v58  ;;  %v1171_v52 = vld [vmem:[#allocation2] sm:$0xff] }
 0x470   :  { %v1175_v6 = vadd.f32 %v1698_v62, %v1171_v52 }
 0x472   :  { %v1165_v34 = vpop.permute.xlu0 %1164  ;;  %v1177_v27 = vmax.f32 %v1175_v6, 0.0 }
 0x473   :  { %1170 = vst.msk [vmem:[#allocation2 + $0x8] sm:$0xff] %vm1168_vm10, %v1165_v34 }
 0x474   :  { %1596 = vmatmul.msk.f32.vlgmr.msra.gmra.mxu2 %vm185_vm1, %v1177_v27 }
 0x47a   :  { %v1172_v5 = vld [vmem:[#allocation2 + $0x8] sm:$0xff] }
 0x47b   :  { %v1176_v18 = vadd.f32 %v1698_v62, %v1172_v5  ;;  %v1448_v5 = vld [vmem:[#allocation9 + $0xd8] sm:$0xff] }
 0x47c   :  { %1466 = vmatpush.msra.mxu1 %v1448_v5 }
 0x47d   :  { %v1178_v44 = vmax.f32 %v1176_v18, 0.0  ;;  %v1447_v18 = vld [vmem:[#allocation9 + $0xd0] sm:$0xff] }
 0x47e   :  { %1467 = vmatpush.msra.mxu1 %v1447_v18 }
 0x47f   :  { %1597 = vmatmul.msk.f32.gmra.mxu2 %vm185_vm1, %v1178_v44  ;;  %v1446_v44 = vld [vmem:[#allocation9 + $0xc8] sm:$0xff] }
 0x480   :  { %1468 = vmatpush.msra.mxu1 %v1446_v44 }
 0x482   :  { %1469 = vmatpush.msra.mxu1 %v1445_v8 }
 0x4f7   :  { %v1210_v21 = vpop.f32.mrf.mxu2 }
 0x4f8   :  { %1598 = vmatmul.msk.f32.vlgmr.msrb.gmra.mxu1 %vm99_vm2, %v1210_v21 }
 0x502   :  { %v1213_v55 = vpop.f32.mrf.mxu2 }
 0x503   :  { %1599 = vmatmul.msk.f32.gmra.mxu1 %vm99_vm2, %v1213_v55  ;;  %1376 = vmatpush.msrb.mxu3 %v1213_v55 }
 0x505   :  { %1377 = vmatpush.msrb.mxu3 %v1210_v21 }
 0x575   :  { %v1243_v17 = vpop.f32.mrf.mxu1 }
 0x576   :  { %1283 = vperm.xlu1 %1693, %v1243_v17   ;;  %1249 = vxpose.xlu0.b32.start [1/2] (short) (narrow) %v1243_v17, 8 }
 0x580   :  { %v1246_v22 = vpop.f32.mrf.mxu1 }
 0x581   :  { %1250 = vxpose.xlu0.b32.end [2/2] (short) (narrow) %v1246_v22, 8  ;;  %1288 = vperm.xlu2 %1694, %v1246_v22  }
 0x5db   :  { %v1289_v15 = vpop.permute.xlu2 %1288 }
 0x5e8   :  { %1695 = vset.pattern.permute.xlu0 %v1958_v51  ;;  %v1284_v41 = vpop.permute.xlu1 %1283 }
 0x61d   :  { %v1265_v30 = vpop.trf.xlu0 }
 0x61e   :  { %v1291_v43 = vperm.slane %v1265_v30, 0 }
 0x620   :  { %v1292_v61 = vadd.f32 %v1291_v43, %v1284_v41  ;;  %v1293_v31 = vadd.f32 %v1291_v43, %v1289_v15  ;;  %v1699_v41 = vld [vmem:[#allocation9 + $0xb8] ss:$0 sm:$0xff] }
 0x622   :  { %v1296_v38 = vmul.f32 0.2, %v1292_v61  ;;  %v1297_v1 = vmul.f32 0.2, %v1293_v31  ;;  %vm1294_vm1 = vcmp.gt.f32.partialorder %v1292_v61, 0.0  ;;  %vm1295_vm11 = vcmp.gt.f32.partialorder %v1293_v31, 0.0 }
 0x624   :  { %v1298_v59 = vsel %vm1294_vm1, %v1292_v61, %v1296_v38  ;;  %v1299_v45 = vsel %vm1295_vm11, %v1293_v31, %v1297_v1 }
 0x625   :  { %v1300_v40 = vadd.f32 %v1298_v59, %v2082_v2  ;;  %v1301_v56 = vadd.f32 %v1299_v45, %v2086_v3  ;;  %v1421_v45 = vld [vmem:[#allocation9 + $0x110] sm:$0x3] }
 0x627   :  { %v1302_v16 = vsel %vm147_vm0, %v1300_v40, -inf  ;;  %v1305_v53 = vsel %vm147_vm0, %v1301_v56, -inf }
 0x628   :  { %1303 = vmax.xlane.f32.xlu1 %v1302_v16  ;;  %1306 = vmax.xlane.f32.xlu2 %v1305_v53  ;;  %v1476_v16 = vld [vmem:[#allocation9 + $0xf0] sm:$0xff]  ;;  %v1475_v53 = vld [vmem:[#allocation9 + $0xe8] sm:$0xff] }
 0x629   :  { %1496 = vmatpush.msra.mxu3 %v1476_v16 }
 0x62b   :  { %1497 = vmatpush.msra.mxu3 %v1475_v53 }
 0x69b   :  { %v1304_v28 = vpop.xlane.xlu1 %1303  ;;  %v1307_v54 = vpop.xlane.xlu2 %1306 }
 0x69c   :  { %v1308_v9 = vsub.f32 %v1300_v40, %v1304_v28  ;;  %v1309_v35 = vsub.f32 %v1301_v56, %v1307_v54  ;;  %v1503_v54 = vld [vmem:[#allocation9 + $0x100] sm:$0xff] }
 0x69d   :  { %1524 = vmatpush.msra.mxu0 %v1503_v54 }
 0x69e   :  { %v1310_v50 = vmul.f32 1.442695, %v1308_v9  ;;  %v1312_v36 = vmul.f32 1.442695, %v1309_v35  ;;  %v1700_v9 = vld [vmem:[#allocation9 + $0xe0] ss:$0 sm:$0xff] }
 0x6a0   :  { %1767 = vpow2.f32 %v1310_v50 }
 0x6a1   :  { %1769 = vpow2.f32 %v1312_v36 }
 0x6a6   :  { %v1768_v42 = vpop.eup %1767 }
 0x6a7   :  { %v1770_v10 = vpop.eup %1769  ;;  %v1314_v2 = vmul.f32 %v1768_v42, %v2198_v7  ;;  %v1701_v42 = vld [vmem:[#allocation9 + $0xf8] ss:$0 sm:$0xff] }
 0x6a8   :  { %v1315_v3 = vmul.f32 %v1770_v10, %v2240_v63 }
 0x6a9   :  { %v1316_v48 = vsel %vm147_vm0, %v1314_v2, 0.0 }
 0x6aa   :  { %1317 = vadd.xlane.f32.xlu0 %v1316_v48  ;;  %v1319_v57 = vsel %vm147_vm0, %v1315_v3, 0.0  ;;  %v1702_v48 = vld [vmem:[#allocation9 + $0x108] ss:$0 sm:$0xff] }
 0x6ab   :  { %1320 = vadd.xlane.f32.xlu2 %v1319_v57 }
 0x71d   :  { %v1318_v23 = vpop.xlane.xlu0 %1317 }
 0x71e   :  { %v1322_v60 = vadd.f32 1e-16, %v1318_v23  ;;  %v1321_v7 = vpop.xlane.xlu2 %1320 }
 0x71f   :  { %v1323_v11 = vadd.f32 1e-16, %v1321_v7 }
 0x720   :  { %1771 = vrcp.f32 %v1322_v60  ;;  %v1335_v29 = vand.u32 2147483648, %v1322_v60  ;;  %v1333_v26 = vand.u32 2147483647, %v1322_v60  ;;  %vm1329_vm3 = vweird.f32 %v1322_v60 }
 0x721   :  { %1773 = vrcp.f32 %v1323_v11  ;;  %v1350_v62 = vand.u32 2147483648, %v1323_v11  ;;  %vm1344_vm5 = vweird.f32 %v1323_v11  ;;  %v1348_v58 = vand.u32 2147483647, %v1323_v11 }
 0x722   :  { %v1336_v24 = vor.u32 1.1754944e-38, %v1335_v29  ;;  %vm1334_vm13 = vcmp.eq.f32.partialorder %v1333_v26, 8.507059e+37 }
 0x723   :  { %v1351_v6 = vor.u32 1.1754944e-38, %v1350_v62  ;;  %vm1349_vm14 = vcmp.eq.f32.partialorder %v1348_v58, 8.507059e+37 }
 0x726   :  { %v1772_v63 = vpop.eup %1771 }
 0x727   :  { %v1774_v4 = vpop.eup %1773  ;;  %v1325_v0 = vmul.f32 %v1772_v63, %v1322_v60  ;;  %vm1330_vm12 = vweird.f32 %v1772_v63 }
 0x728   :  { %v1340_v13 = vmul.f32 %v1774_v4, %v1323_v11  ;;  %vm1331_vm4 = vmor %vm1329_vm3, %vm1330_vm12  ;;  %vm1345_vm8 = vweird.f32 %v1774_v4 }
 0x729   :  { %v1326_v46 = vsub.f32 1.0, %v1325_v0  ;;  %vm1346_vm6 = vmor %vm1344_vm5, %vm1345_vm8 }
 0x72a   :  { %v1341_v39 = vsub.f32 1.0, %v1340_v13 }
 0x72b   :  { %v1327_v37 = vmul.f32 %v1772_v63, %v1326_v46 }
 0x72c   :  { %v1342_v19 = vmul.f32 %v1774_v4, %v1341_v39 }
 0x72d   :  { %v1328_v12 = vadd.f32 %v1772_v63, %v1327_v37 }
 0x72e   :  { %v1343_v49 = vadd.f32 %v1774_v4, %v1342_v19 }
 0x72f   :  { %v1332_v25 = vsel %vm1331_vm4, %v1772_v63, %v1328_v12 }
 0x730   :  { %v1337_v14 = vsel %vm1334_vm13, %v1336_v24, %v1332_v25  ;;  %v1347_v52 = vsel %vm1346_vm6, %v1774_v4, %v1343_v49 }
 0x731   :  { %v1338_v20 = vmul.f32 %v1337_v14, %v1314_v2  ;;  %v1352_v34 = vsel %vm1349_vm14, %v1351_v6, %v1347_v52 }
 0x732   :  { %v1353_v27 = vmul.f32 %v1352_v34, %v1315_v3 }
 0x733   :  { %1600 = vmatmul.msk.f32.vlgmr.msrb.gmra.mxu3 %vm147_vm0, %v1338_v20  ;;  %1604 = vmatmul.msk.f32.vlgmr.msrb.gmra.mxu0 %vm147_vm0, %v1338_v20 }
 0x73b   :  { %1601 = vmatmul.msk.f32.gmra.mxu3 %vm147_vm0, %v1353_v27  ;;  %1605 = vmatmul.msk.f32.gmra.mxu0 %vm147_vm0, %v1353_v27 }
 0x7b0   :  { %v1402_v51 = vpop.f32.mrf.mxu0 }
 0x7b1   :  { %v1408_v55 = vmul.f32 %v2033_v32, %v1402_v51 }
 0x7b3   :  { %v1410_v30 = vsel %vm99_vm2, %v1408_v55, 0.0 }
 0x7b6   :  { %v1379_v21 = vpop.f32.mrf.mxu3 }
 0x7b7   :  { %v1380_v59 = vadd.f32 %v1699_v41, %v1379_v21 }
 0x7b8   :  { %v1405_v17 = vpop.f32.mrf.mxu0 }
 0x7b9   :  { %v1409_v22 = vmul.f32 %v2039_v33, %v1405_v17 }
 0x7bb   :  { %v1411_v43 = vsel %vm99_vm2, %v1409_v22, 0.0 }
 0x7bc   :  { %v1412_v15 = vadd.f32 %v1411_v43, %v1410_v30 }
 0x7be   :  { %v1413_v61 = vrot.slane %v1412_v15, 4  ;;  %v1382_v31 = vpop.f32.mrf.mxu3 }
 0x7bf   :  { %v1383_v38 = vadd.f32 %v1699_v41, %v1382_v31 }
 0x7c0   :  { %v1414_v1 = vadd.f32 %v1413_v61, %v1412_v15 }
 0x7c1   :  { %1439 = vmatpush.msrb.mxu2 %v1383_v38 }
 0x7c2   :  { %v1415_v40 = vrot.slane %v1414_v1, 2 }
 0x7c3   :  { %1440 = vmatpush.msrb.mxu2 %v1380_v59 }
 0x7c4   :  { %v1416_v56 = vadd.f32 %v1415_v40, %v1414_v1  ;;  %1606 = vmatmul.msk.f32.vlgmr.msrb.gmra.mxu2 %vm147_vm0, %v1421_v45 }
 0x7c6   :  { %v1417_v32 = vrot.slane %v1416_v56, 1 }
 0x7c8   :  { %v1418_v33 = vadd.f32 %v1417_v32, %v1416_v56 }
 0x7ca   :  { %1420 = vst.msk [vmem:[#allocation12] sm:$0x1] %vm1419_vm15, %v1418_v33 }
 0x7cb   :  { %1552 = dma.vmem_to_hbm [thread:$0]  %s1548_s25, 16, %s1550_s28, [#allocation13]  }
 0x847   :  { %v1442_v28 = vpop.f32.mrf.mxu2 }
 0x848   :  { %1607 = vmatmul.msk.f32.vlgmr.msra.gmra.mxu1 %vm99_vm2, %v1442_v28 }
 0x8c5   :  { %v1471_v35 = vpop.f32.mrf.mxu1 }
 0x8c6   :  { %v1472_v50 = vadd.f32 %v1700_v9, %v1471_v35 }
 0x8c8   :  { %v1474_v36 = vmax.f32 %v1472_v50, 0.0 }
 0x8ca   :  { %1608 = vmatmul.msk.f32.vlgmr.msra.gmra.mxu3 %vm147_vm0, %v1474_v36  ;;  %vm1529_vm0 = vcmask 17408  }
 0x94d   :  { %v1499_v10 = vpop.f32.mrf.mxu3 }
 0x94e   :  { %v1500_v2 = vadd.f32 %v1701_v42, %v1499_v10 }
 0x950   :  { %v1502_v3 = vmax.f32 %v1500_v2, 0.0 }
 0x952   :  { %1609 = vmatmul.msk.f32.vlgmr.msra.gmra.mxu0 %vm349_vm7, %v1502_v3 }
 0x9cf   :  { %v1526_v57 = vpop.f32.mrf.mxu0 }
 0x9d0   :  { %v1527_v47 = vadd.f32 %v1702_v48, %v1526_v57 }
 0x9d2   :  { %1530 = vst.msk [vmem:[#allocation11] sm:$0x3] %vm1529_vm0, %v1527_v47 }
 0x9d3   :  { %1541 = dma.vmem_to_hbm [thread:$0]  %s1537_s30, 32, %s1539_s7, [#allocation5]  }
 0x9d4   :  { %1925 = dma.done.wait [#allocation5], 32  }
 0x9d5   :  { %1926 = vsyncadd [#allocation5], 4294967264 }
 0x9d6   :  { %1927 = dma.done.wait [#allocation13], 16  }
 0x9d7   :  { %1928 = vsyncadd [#allocation13], 4294967280 }
 0x9d8   :  { %1561 = vsyncpa [#allocation4], 1 }
 0x9d9   :  { %1562 = vsyncpa [#allocation7], 1 }
 0x9da   :  { %1563 = vsyncpa [#allocation10], 1 }
 0x9db   :  { %1564 = vsyncpa [#allocation5], 1 }
 0x9dc   :  { %1565 = vsyncpa [#allocation13], 1 }

</bundles_post_ra>
